<compile_context>
chip_gen: v7x
topology: tpu7x:2x2x1
jax: 0.10.0
libtpu: 0.0.40
codegen_flags: <defaults>
</compile_context>

<pallas_src>
import jax
import jax.numpy as jnp
from jax.experimental import pallas as pl
from jax.experimental.pallas import tpu as pltpu

# encoder: 784 -> 128 -> 64 -> 16 -> 10   (ReLU after all but the last linear)
# decoder: 10 -> 16 -> 64 -> 128 -> 784   (ReLU after every linear, incl. the last)
LAYER_DIMS = [(784, 128), (128, 64), (64, 16), (16, 10),
              (10, 16), (16, 64), (64, 128), (128, 784)]
# lane-dense padded dims (multiples of 128 everywhere except the raw 784 input)
PAD_IN  = [784, 128, 128, 128, 128, 128, 128, 128]
PAD_OUT = [128, 128, 128, 128, 128, 128, 128, 896]
CODES_PAD = 128   # true codes dim = 10
DEC_PAD = 896     # true decoded dim = 784


def _round_up(n, m):
    return ((n + m - 1) // m) * m


def _layer(h, w_ref, b_ref, relu):
    # bf16 MXU operands with f32 accumulation; bias add + ReLU in f32 on the VPU
    # (v5e VPU has no bf16 elementwise). astype is a no-op when h is already bf16.
    y = jnp.dot(h.astype(jnp.bfloat16), w_ref[...],
                preferred_element_type=jnp.float32) + b_ref[...]
    return jnp.maximum(y, 0.0) if relu else y


def autoencoder_kernel(x_ref,
                       ew0, eb0, ew1, eb1, ew2, eb2, ew3, eb3,
                       dw0, db0, dw1, db1, dw2, db2, dw3, db3,
                       codes_ref, dec_ref):
    h = x_ref[...]                                # bf16 straight from HBM
    # --- encoder ---
    h = _layer(h, ew0, eb0, True)
    h = _layer(h, ew1, eb1, True)
    h = _layer(h, ew2, eb2, True)
    codes = _layer(h, ew3, eb3, False)            # no ReLU on final encoder layer
    codes_ref[...] = codes.astype(codes_ref.dtype)
    # --- decoder (fed with full-precision f32 codes) ---
    h = _layer(codes, dw0, db0, True)
    h = _layer(h, dw1, db1, True)
    h = _layer(h, dw2, db2, True)
    h = _layer(h, dw3, db3, True)                 # final decoder layer HAS ReLU (matches spec)
    dec_ref[...] = h.astype(dec_ref.dtype)


def _pad_to(a, shape):
    return jnp.pad(a, [(0, s - d) for d, s in zip(a.shape, shape)])


def pack_params(params):
    """Zero-pad every layer to lane-dense widths; weights -> bf16, biases -> f32 (1, out).

    Call ONCE (e.g. at init) and reuse the result; this is intentionally outside the
    per-forward path.
    """
    flat = []
    for (w, b), pin, pout in zip(params, PAD_IN, PAD_OUT):
        flat.append(_pad_to(w, (pin, pout)).astype(jnp.bfloat16))
        flat.append(_pad_to(b.reshape(1, -1), (1, pout)).astype(jnp.float32))
    return flat


def autoencoder_forward(x, packed_params, *, block_b=2048):
    """x: (B, 784), ideally bf16. packed_params: output of pack_params()."""
    B, D = x.shape
    assert D == 784
    if x.dtype != jnp.bfloat16:
        # Callers should pass bf16 to avoid this extra HBM pass.
        x = x.astype(jnp.bfloat16)

    # Batch tile: multiple of 8 rows, at most block_b, and capped at ~half the batch so
    # the grid has >= 2 steps (lets ("parallel",) split work across v7x's 2 TensorCores).
    half = _round_up(pl.cdiv(_round_up(B, 8), 2), 8)
    tb = max(8, min(block_b, half))
    grid = (pl.cdiv(B, tb),)   # ragged tail handled by Pallas block masking; no jnp.pad

    x_spec = pl.BlockSpec((tb, 784), lambda i: (i, 0))
    # Weights/biases: same full-array block every grid step -> fetched once, stay resident.
    # TODO(synk): pipeline_mode=pl.Buffered(1) (or concatenating the 128x128 layers) would
    # trim ~0.6 MiB of double-buffer VMEM; kept at the default for lowering safety.
    param_specs = [pl.BlockSpec(p.shape, lambda i: (0, 0)) for p in packed_params]

    codes_pad, dec_pad = pl.pallas_call(
        autoencoder_kernel,
        grid=grid,
        in_specs=[x_spec] + param_specs,
        out_specs=(
            pl.BlockSpec((tb, CODES_PAD), lambda i: (i, 0)),
            pl.BlockSpec((tb, DEC_PAD), lambda i: (i, 0)),
        ),
        out_shape=(
            jax.ShapeDtypeStruct((B, CODES_PAD), jnp.bfloat16),   # bf16 writeback
            jax.ShapeDtypeStruct((B, DEC_PAD), jnp.bfloat16),
        ),
        compiler_params=pltpu.CompilerParams(
            dimension_semantics=("parallel",),   # batch tiles are independent
            vmem_limit_bytes=48 << 20,           # fits v7x 64 MiB phys; plenty on v5e/v6e
        ),
    )(x, *packed_params)

    # Strip lane padding (codes 128->10, decoded 896->784). Cast here if callers need f32.
    return codes_pad[:, :10], dec_pad[:, :784]


def init_params(key):
    """Deterministic init mimicking torch.nn.Linear default: U(-1/sqrt(fan_in), 1/sqrt(fan_in))."""
    params = []
    keys = jax.random.split(key, 2 * len(LAYER_DIMS))
    for i, (fan_in, fan_out) in enumerate(LAYER_DIMS):
        bound = 1.0 / (fan_in ** 0.5)
        w = jax.random.uniform(keys[2 * i], (fan_in, fan_out), jnp.float32, -bound, bound)
        b = jax.random.uniform(keys[2 * i + 1], (fan_out,), jnp.float32, -bound, bound)
        params.append((w, b))
    return params


def reference_forward(x, params):
    """Plain-JAX f32 reference for sanity checking."""
    h = x
    for i in range(4):                      # encoder
        w, b = params[i]
        h = h @ w + b
        if i < 3:
            h = jnp.maximum(h, 0.0)
    codes = h
    h = codes
    for i in range(4, 8):                   # decoder
        w, b = params[i]
        h = jnp.maximum(h @ w + b, 0.0)
    return codes, h


if __name__ == "__main__":
    key = jax.random.PRNGKey(0)
    k_x, k_p = jax.random.split(key)
    B = 16
    x_f32 = jax.random.uniform(k_x, (B, 784), jnp.float32)   # MNIST-like flattened input
    params = init_params(k_p)

    packed = pack_params(params)            # pad + bf16-cast once, outside the call path
    x_bf16 = x_f32.astype(jnp.bfloat16)     # bf16 input halves HBM read traffic

    fwd = jax.jit(autoencoder_forward)      # B=16 -> tb=8, 2 grid steps (multi-step path)
    codes, decoded = fwd(x_bf16, packed)
    codes, decoded = jax.block_until_ready((codes, decoded))

    ref_codes, ref_dec = reference_forward(x_f32, params)
    assert codes.shape == (B, 10) and decoded.shape == (B, 784)
    # bf16 input / weights / outputs vs f32 reference -> loose tolerance
    assert jnp.allclose(codes.astype(jnp.float32), ref_codes, atol=3e-2, rtol=3e-2)
    assert jnp.allclose(decoded.astype(jnp.float32), ref_dec, atol=3e-2, rtol=3e-2)

    print("KERNEL_OK")
</pallas_src>

<mosaic_0001>
module attributes {stable_mosaic.version = 11 : i64} {
  func.func @autoencoder_kernel(%arg0: i32, %arg1: memref<8x784xbf16, #tpu.memory_space<vmem>>, %arg2: memref<784x128xbf16, #tpu.memory_space<vmem>>, %arg3: memref<1x128xf32, #tpu.memory_space<vmem>>, %arg4: memref<128x128xbf16, #tpu.memory_space<vmem>>, %arg5: memref<1x128xf32, #tpu.memory_space<vmem>>, %arg6: memref<128x128xbf16, #tpu.memory_space<vmem>>, %arg7: memref<1x128xf32, #tpu.memory_space<vmem>>, %arg8: memref<128x128xbf16, #tpu.memory_space<vmem>>, %arg9: memref<1x128xf32, #tpu.memory_space<vmem>>, %arg10: memref<128x128xbf16, #tpu.memory_space<vmem>>, %arg11: memref<1x128xf32, #tpu.memory_space<vmem>>, %arg12: memref<128x128xbf16, #tpu.memory_space<vmem>>, %arg13: memref<1x128xf32, #tpu.memory_space<vmem>>, %arg14: memref<128x128xbf16, #tpu.memory_space<vmem>>, %arg15: memref<1x128xf32, #tpu.memory_space<vmem>>, %arg16: memref<128x896xbf16, #tpu.memory_space<vmem>>, %arg17: memref<1x896xf32, #tpu.memory_space<vmem>>, %arg18: memref<8x128xbf16, #tpu.memory_space<vmem>>, %arg19: memref<8x896xbf16, #tpu.memory_space<vmem>>) attributes {dimension_semantics = [#tpu.dimension_semantics<parallel>], iteration_bounds = array<i64: 2>, scalar_prefetch = 0 : i64, scratch_operands = 0 : i64, tpu.core_type = #tpu.core_type<tc>, window_params = [{transform_indices = @transform_0, window_bounds = array<i64: 8, 784>}, {pipeline_mode = #tpu.pipeline_mode<synchronous>, transform_indices = @transform_1, window_bounds = array<i64: 784, 128>}, {pipeline_mode = #tpu.pipeline_mode<synchronous>, transform_indices = @transform_2, window_bounds = array<i64: 1, 128>}, {pipeline_mode = #tpu.pipeline_mode<synchronous>, transform_indices = @transform_3, window_bounds = array<i64: 128, 128>}, {pipeline_mode = #tpu.pipeline_mode<synchronous>, transform_indices = @transform_4, window_bounds = array<i64: 1, 128>}, {pipeline_mode = #tpu.pipeline_mode<synchronous>, transform_indices = @transform_5, window_bounds = array<i64: 128, 128>}, {pipeline_mode = #tpu.pipeline_mode<synchronous>, transform_indices = @transform_6, window_bounds = array<i64: 1, 128>}, {pipeline_mode = #tpu.pipeline_mode<synchronous>, transform_indices = @transform_7, window_bounds = array<i64: 128, 128>}, {pipeline_mode = #tpu.pipeline_mode<synchronous>, transform_indices = @transform_8, window_bounds = array<i64: 1, 128>}, {pipeline_mode = #tpu.pipeline_mode<synchronous>, transform_indices = @transform_9, window_bounds = array<i64: 128, 128>}, {pipeline_mode = #tpu.pipeline_mode<synchronous>, transform_indices = @transform_10, window_bounds = array<i64: 1, 128>}, {pipeline_mode = #tpu.pipeline_mode<synchronous>, transform_indices = @transform_11, window_bounds = array<i64: 128, 128>}, {pipeline_mode = #tpu.pipeline_mode<synchronous>, transform_indices = @transform_12, window_bounds = array<i64: 1, 128>}, {pipeline_mode = #tpu.pipeline_mode<synchronous>, transform_indices = @transform_13, window_bounds = array<i64: 128, 128>}, {pipeline_mode = #tpu.pipeline_mode<synchronous>, transform_indices = @transform_14, window_bounds = array<i64: 1, 128>}, {pipeline_mode = #tpu.pipeline_mode<synchronous>, transform_indices = @transform_15, window_bounds = array<i64: 128, 896>}, {pipeline_mode = #tpu.pipeline_mode<synchronous>, transform_indices = @transform_16, window_bounds = array<i64: 1, 896>}, {transform_indices = @transform_17, window_bounds = array<i64: 8, 128>}, {transform_indices = @transform_18, window_bounds = array<i64: 8, 896>}]} {
    %c0 = arith.constant 0 : index
    %c0_0 = arith.constant 0 : index
    %0 = vector.load %arg1[%c0, %c0_0] : memref<8x784xbf16, #tpu.memory_space<vmem>>, vector<8x784xbf16>
    %c0_1 = arith.constant 0 : index
    %c0_2 = arith.constant 0 : index
    %1 = vector.load %arg2[%c0_1, %c0_2] : memref<784x128xbf16, #tpu.memory_space<vmem>>, vector<784x128xbf16>
    %cst = arith.constant dense<0.000000e+00> : vector<8x128xf32>
    %2 = tpu.matmul %0, %1, %cst {dimension_numbers = #tpu.dot_dimension_numbers<[1], [0], [0], [1], [0, 0, 1, 1], [], []>} : vector<8x784xbf16>, vector<784x128xbf16>, vector<8x128xf32> -> vector<8x128xf32>
    %c0_3 = arith.constant 0 : index
    %c0_4 = arith.constant 0 : index
    %3 = vector.load %arg3[%c0_3, %c0_4] : memref<1x128xf32, #tpu.memory_space<vmem>>, vector<1x128xf32>
    %4 = vector.broadcast %3 : vector<1x128xf32> to vector<8x128xf32>
    %5 = arith.addf %2, %4 : vector<8x128xf32>
    %cst_5 = arith.constant 0.000000e+00 : f32
    %6 = vector.broadcast %cst_5 : f32 to vector<8x128xf32>
    %7 = arith.maximumf %5, %6 : vector<8x128xf32>
    %8 = arith.truncf %7 : vector<8x128xf32> to vector<8x128xbf16>
    %c0_6 = arith.constant 0 : index
    %c0_7 = arith.constant 0 : index
    %9 = vector.load %arg4[%c0_6, %c0_7] : memref<128x128xbf16, #tpu.memory_space<vmem>>, vector<128x128xbf16>
    %cst_8 = arith.constant dense<0.000000e+00> : vector<8x128xf32>
    %10 = tpu.matmul %8, %9, %cst_8 {dimension_numbers = #tpu.dot_dimension_numbers<[1], [0], [0], [1], [0, 0, 1, 1], [], []>} : vector<8x128xbf16>, vector<128x128xbf16>, vector<8x128xf32> -> vector<8x128xf32>
    %c0_9 = arith.constant 0 : index
    %c0_10 = arith.constant 0 : index
    %11 = vector.load %arg5[%c0_9, %c0_10] : memref<1x128xf32, #tpu.memory_space<vmem>>, vector<1x128xf32>
    %12 = vector.broadcast %11 : vector<1x128xf32> to vector<8x128xf32>
    %13 = arith.addf %10, %12 : vector<8x128xf32>
    %cst_11 = arith.constant 0.000000e+00 : f32
    %14 = vector.broadcast %cst_11 : f32 to vector<8x128xf32>
    %15 = arith.maximumf %13, %14 : vector<8x128xf32>
    %16 = arith.truncf %15 : vector<8x128xf32> to vector<8x128xbf16>
    %c0_12 = arith.constant 0 : index
    %c0_13 = arith.constant 0 : index
    %17 = vector.load %arg6[%c0_12, %c0_13] : memref<128x128xbf16, #tpu.memory_space<vmem>>, vector<128x128xbf16>
    %cst_14 = arith.constant dense<0.000000e+00> : vector<8x128xf32>
    %18 = tpu.matmul %16, %17, %cst_14 {dimension_numbers = #tpu.dot_dimension_numbers<[1], [0], [0], [1], [0, 0, 1, 1], [], []>} : vector<8x128xbf16>, vector<128x128xbf16>, vector<8x128xf32> -> vector<8x128xf32>
    %c0_15 = arith.constant 0 : index
    %c0_16 = arith.constant 0 : index
    %19 = vector.load %arg7[%c0_15, %c0_16] : memref<1x128xf32, #tpu.memory_space<vmem>>, vector<1x128xf32>
    %20 = vector.broadcast %19 : vector<1x128xf32> to vector<8x128xf32>
    %21 = arith.addf %18, %20 : vector<8x128xf32>
    %cst_17 = arith.constant 0.000000e+00 : f32
    %22 = vector.broadcast %cst_17 : f32 to vector<8x128xf32>
    %23 = arith.maximumf %21, %22 : vector<8x128xf32>
    %24 = arith.truncf %23 : vector<8x128xf32> to vector<8x128xbf16>
    %c0_18 = arith.constant 0 : index
    %c0_19 = arith.constant 0 : index
    %25 = vector.load %arg8[%c0_18, %c0_19] : memref<128x128xbf16, #tpu.memory_space<vmem>>, vector<128x128xbf16>
    %cst_20 = arith.constant dense<0.000000e+00> : vector<8x128xf32>
    %26 = tpu.matmul %24, %25, %cst_20 {dimension_numbers = #tpu.dot_dimension_numbers<[1], [0], [0], [1], [0, 0, 1, 1], [], []>} : vector<8x128xbf16>, vector<128x128xbf16>, vector<8x128xf32> -> vector<8x128xf32>
    %c0_21 = arith.constant 0 : index
    %c0_22 = arith.constant 0 : index
    %27 = vector.load %arg9[%c0_21, %c0_22] : memref<1x128xf32, #tpu.memory_space<vmem>>, vector<1x128xf32>
    %28 = vector.broadcast %27 : vector<1x128xf32> to vector<8x128xf32>
    %29 = arith.addf %26, %28 : vector<8x128xf32>
    %30 = arith.truncf %29 : vector<8x128xf32> to vector<8x128xbf16>
    %c0_23 = arith.constant 0 : index
    %c0_24 = arith.constant 0 : index
    %31 = vector.load %arg18[%c0_23, %c0_24] : memref<8x128xbf16, #tpu.memory_space<vmem>>, vector<8x128xbf16>
    tpu.vector_store %arg18[%c0_23, %c0_24], %30 {strides = array<i32>} : memref<8x128xbf16, #tpu.memory_space<vmem>>, vector<8x128xbf16>,
    %32 = arith.truncf %29 : vector<8x128xf32> to vector<8x128xbf16>
    %c0_25 = arith.constant 0 : index
    %c0_26 = arith.constant 0 : index
    %33 = vector.load %arg10[%c0_25, %c0_26] : memref<128x128xbf16, #tpu.memory_space<vmem>>, vector<128x128xbf16>
    %cst_27 = arith.constant dense<0.000000e+00> : vector<8x128xf32>
    %34 = tpu.matmul %32, %33, %cst_27 {dimension_numbers = #tpu.dot_dimension_numbers<[1], [0], [0], [1], [0, 0, 1, 1], [], []>} : vector<8x128xbf16>, vector<128x128xbf16>, vector<8x128xf32> -> vector<8x128xf32>
    %c0_28 = arith.constant 0 : index
    %c0_29 = arith.constant 0 : index
    %35 = vector.load %arg11[%c0_28, %c0_29] : memref<1x128xf32, #tpu.memory_space<vmem>>, vector<1x128xf32>
    %36 = vector.broadcast %35 : vector<1x128xf32> to vector<8x128xf32>
    %37 = arith.addf %34, %36 : vector<8x128xf32>
    %cst_30 = arith.constant 0.000000e+00 : f32
    %38 = vector.broadcast %cst_30 : f32 to vector<8x128xf32>
    %39 = arith.maximumf %37, %38 : vector<8x128xf32>
    %40 = arith.truncf %39 : vector<8x128xf32> to vector<8x128xbf16>
    %c0_31 = arith.constant 0 : index
    %c0_32 = arith.constant 0 : index
    %41 = vector.load %arg12[%c0_31, %c0_32] : memref<128x128xbf16, #tpu.memory_space<vmem>>, vector<128x128xbf16>
    %cst_33 = arith.constant dense<0.000000e+00> : vector<8x128xf32>
    %42 = tpu.matmul %40, %41, %cst_33 {dimension_numbers = #tpu.dot_dimension_numbers<[1], [0], [0], [1], [0, 0, 1, 1], [], []>} : vector<8x128xbf16>, vector<128x128xbf16>, vector<8x128xf32> -> vector<8x128xf32>
    %c0_34 = arith.constant 0 : index
    %c0_35 = arith.constant 0 : index
    %43 = vector.load %arg13[%c0_34, %c0_35] : memref<1x128xf32, #tpu.memory_space<vmem>>, vector<1x128xf32>
    %44 = vector.broadcast %43 : vector<1x128xf32> to vector<8x128xf32>
    %45 = arith.addf %42, %44 : vector<8x128xf32>
    %cst_36 = arith.constant 0.000000e+00 : f32
    %46 = vector.broadcast %cst_36 : f32 to vector<8x128xf32>
    %47 = arith.maximumf %45, %46 : vector<8x128xf32>
    %48 = arith.truncf %47 : vector<8x128xf32> to vector<8x128xbf16>
    %c0_37 = arith.constant 0 : index
    %c0_38 = arith.constant 0 : index
    %49 = vector.load %arg14[%c0_37, %c0_38] : memref<128x128xbf16, #tpu.memory_space<vmem>>, vector<128x128xbf16>
    %cst_39 = arith.constant dense<0.000000e+00> : vector<8x128xf32>
    %50 = tpu.matmul %48, %49, %cst_39 {dimension_numbers = #tpu.dot_dimension_numbers<[1], [0], [0], [1], [0, 0, 1, 1], [], []>} : vector<8x128xbf16>, vector<128x128xbf16>, vector<8x128xf32> -> vector<8x128xf32>
    %c0_40 = arith.constant 0 : index
    %c0_41 = arith.constant 0 : index
    %51 = vector.load %arg15[%c0_40, %c0_41] : memref<1x128xf32, #tpu.memory_space<vmem>>, vector<1x128xf32>
    %52 = vector.broadcast %51 : vector<1x128xf32> to vector<8x128xf32>
    %53 = arith.addf %50, %52 : vector<8x128xf32>
    %cst_42 = arith.constant 0.000000e+00 : f32
    %54 = vector.broadcast %cst_42 : f32 to vector<8x128xf32>
    %55 = arith.maximumf %53, %54 : vector<8x128xf32>
    %56 = arith.truncf %55 : vector<8x128xf32> to vector<8x128xbf16>
    %c0_43 = arith.constant 0 : index
    %c0_44 = arith.constant 0 : index
    %57 = vector.load %arg16[%c0_43, %c0_44] : memref<128x896xbf16, #tpu.memory_space<vmem>>, vector<128x896xbf16>
    %cst_45 = arith.constant dense<0.000000e+00> : vector<8x896xf32>
    %58 = tpu.matmul %56, %57, %cst_45 {dimension_numbers = #tpu.dot_dimension_numbers<[1], [0], [0], [1], [0, 0, 1, 1], [], []>} : vector<8x128xbf16>, vector<128x896xbf16>, vector<8x896xf32> -> vector<8x896xf32>
    %c0_46 = arith.constant 0 : index
    %c0_47 = arith.constant 0 : index
    %59 = vector.load %arg17[%c0_46, %c0_47] : memref<1x896xf32, #tpu.memory_space<vmem>>, vector<1x896xf32>
    %60 = vector.broadcast %59 : vector<1x896xf32> to vector<8x896xf32>
    %61 = arith.addf %58, %60 : vector<8x896xf32>
    %cst_48 = arith.constant 0.000000e+00 : f32
    %62 = vector.broadcast %cst_48 : f32 to vector<8x896xf32>
    %63 = arith.maximumf %61, %62 : vector<8x896xf32>
    %64 = arith.truncf %63 : vector<8x896xf32> to vector<8x896xbf16>
    %c0_49 = arith.constant 0 : index
    %c0_50 = arith.constant 0 : index
    %65 = vector.load %arg19[%c0_49, %c0_50] : memref<8x896xbf16, #tpu.memory_space<vmem>>, vector<8x896xbf16>
    tpu.vector_store %arg19[%c0_49, %c0_50], %64 {strides = array<i32>} : memref<8x896xbf16, #tpu.memory_space<vmem>>, vector<8x896xbf16>,
    return
  }
  func.func @transform_0(%arg0: i32) -> (i32, i32) {
    %c0_i32 = arith.constant 0 : i32
    %c0_i32_0 = arith.constant 0 : i32
    return %arg0, %c0_i32 : i32, i32
  }
  func.func @transform_1(%arg0: i32) -> (i32, i32) {
    %c0_i32 = arith.constant 0 : i32
    %c0_i32_0 = arith.constant 0 : i32
    %c0_i32_1 = arith.constant 0 : i32
    return %c0_i32, %c0_i32_0 : i32, i32
  }
  func.func @transform_2(%arg0: i32) -> (i32, i32) {
    %c0_i32 = arith.constant 0 : i32
    %c0_i32_0 = arith.constant 0 : i32
    %c0_i32_1 = arith.constant 0 : i32
    return %c0_i32, %c0_i32_0 : i32, i32
  }
  func.func @transform_3(%arg0: i32) -> (i32, i32) {
    %c0_i32 = arith.constant 0 : i32
    %c0_i32_0 = arith.constant 0 : i32
    %c0_i32_1 = arith.constant 0 : i32
    return %c0_i32, %c0_i32_0 : i32, i32
  }
  func.func @transform_4(%arg0: i32) -> (i32, i32) {
    %c0_i32 = arith.constant 0 : i32
    %c0_i32_0 = arith.constant 0 : i32
    %c0_i32_1 = arith.constant 0 : i32
    return %c0_i32, %c0_i32_0 : i32, i32
  }
  func.func @transform_5(%arg0: i32) -> (i32, i32) {
    %c0_i32 = arith.constant 0 : i32
    %c0_i32_0 = arith.constant 0 : i32
    %c0_i32_1 = arith.constant 0 : i32
    return %c0_i32, %c0_i32_0 : i32, i32
  }
  func.func @transform_6(%arg0: i32) -> (i32, i32) {
    %c0_i32 = arith.constant 0 : i32
    %c0_i32_0 = arith.constant 0 : i32
    %c0_i32_1 = arith.constant 0 : i32
    return %c0_i32, %c0_i32_0 : i32, i32
  }
  func.func @transform_7(%arg0: i32) -> (i32, i32) {
    %c0_i32 = arith.constant 0 : i32
    %c0_i32_0 = arith.constant 0 : i32
    %c0_i32_1 = arith.constant 0 : i32
    return %c0_i32, %c0_i32_0 : i32, i32
  }
  func.func @transform_8(%arg0: i32) -> (i32, i32) {
    %c0_i32 = arith.constant 0 : i32
    %c0_i32_0 = arith.constant 0 : i32
    %c0_i32_1 = arith.constant 0 : i32
    return %c0_i32, %c0_i32_0 : i32, i32
  }
  func.func @transform_9(%arg0: i32) -> (i32, i32) {
    %c0_i32 = arith.constant 0 : i32
    %c0_i32_0 = arith.constant 0 : i32
    %c0_i32_1 = arith.constant 0 : i32
    return %c0_i32, %c0_i32_0 : i32, i32
  }
  func.func @transform_10(%arg0: i32) -> (i32, i32) {
    %c0_i32 = arith.constant 0 : i32
    %c0_i32_0 = arith.constant 0 : i32
    %c0_i32_1 = arith.constant 0 : i32
    return %c0_i32, %c0_i32_0 : i32, i32
  }
  func.func @transform_11(%arg0: i32) -> (i32, i32) {
    %c0_i32 = arith.constant 0 : i32
    %c0_i32_0 = arith.constant 0 : i32
    %c0_i32_1 = arith.constant 0 : i32
    return %c0_i32, %c0_i32_0 : i32, i32
  }
  func.func @transform_12(%arg0: i32) -> (i32, i32) {
    %c0_i32 = arith.constant 0 : i32
    %c0_i32_0 = arith.constant 0 : i32
    %c0_i32_1 = arith.constant 0 : i32
    return %c0_i32, %c0_i32_0 : i32, i32
  }
  func.func @transform_13(%arg0: i32) -> (i32, i32) {
    %c0_i32 = arith.constant 0 : i32
    %c0_i32_0 = arith.constant 0 : i32
    %c0_i32_1 = arith.constant 0 : i32
    return %c0_i32, %c0_i32_0 : i32, i32
  }
  func.func @transform_14(%arg0: i32) -> (i32, i32) {
    %c0_i32 = arith.constant 0 : i32
    %c0_i32_0 = arith.constant 0 : i32
    %c0_i32_1 = arith.constant 0 : i32
    return %c0_i32, %c0_i32_0 : i32, i32
  }
  func.func @transform_15(%arg0: i32) -> (i32, i32) {
    %c0_i32 = arith.constant 0 : i32
    %c0_i32_0 = arith.constant 0 : i32
    %c0_i32_1 = arith.constant 0 : i32
    return %c0_i32, %c0_i32_0 : i32, i32
  }
  func.func @transform_16(%arg0: i32) -> (i32, i32) {
    %c0_i32 = arith.constant 0 : i32
    %c0_i32_0 = arith.constant 0 : i32
    %c0_i32_1 = arith.constant 0 : i32
    return %c0_i32, %c0_i32_0 : i32, i32
  }
  func.func @transform_17(%arg0: i32) -> (i32, i32) {
    %c0_i32 = arith.constant 0 : i32
    %c0_i32_0 = arith.constant 0 : i32
    return %arg0, %c0_i32 : i32, i32
  }
  func.func @transform_18(%arg0: i32) -> (i32, i32) {
    %c0_i32 = arith.constant 0 : i32
    %c0_i32_0 = arith.constant 0 : i32
    return %arg0, %c0_i32 : i32, i32
  }
}

</mosaic_0001>

<bundles_post_ra>
// kernel: autoencoder_forward.1
= control target key start
LH: loop header
LB: loop body
LE: loop exit
PB: predicated region body
PF: predicated region fallthrough
CT: control target
= control target key end

     0   :  { %s4595_s0 = inlined_call_operand.hbm [shape: bf16[16,784], index: 0, kind: input, shape index: {}]   ;;  %s4596_s1 = inlined_call_operand.hbm [shape: bf16[784,128], index: 1, kind: input, shape index: {}]   ;;  %s4597_s2 = inlined_call_operand.vmem [shape: f32[1,128], index: 2, kind: input, shape index: {}]   ;;  %s4598_s3 = inlined_call_operand.hbm [shape: bf16[128,128], index: 3, kind: input, shape index: {}]   ;;  %s4599_s4 = inlined_call_operand.vmem [shape: f32[1,128], index: 4, kind: input, shape index: {}]   ;;  %s4600_s5 = inlined_call_operand.hbm [shape: bf16[128,128], index: 5, kind: input, shape index: {}]   ;;  %s4601_s6 = inlined_call_operand.vmem [shape: f32[1,128], index: 6, kind: input, shape index: {}]   ;;  %s4602_s7 = inlined_call_operand.hbm [shape: bf16[128,128], index: 7, kind: input, shape index: {}]   ;;  %s4603_s8 = inlined_call_operand.vmem [shape: f32[1,128], index: 8, kind: input, shape index: {}]   ;;  %s4604_s9 = inlined_call_operand.hbm [shape: bf16[128,128], index: 9, kind: input, shape index: {}]   ;;  %s4605_s10 = inlined_call_operand.vmem [shape: f32[1,128], index: 10, kind: input, shape index: {}]   ;;  %s4606_s11 = inlined_call_operand.hbm [shape: bf16[128,128], index: 11, kind: input, shape index: {}]   ;;  %s4607_s12 = inlined_call_operand.vmem [shape: f32[1,128], index: 12, kind: input, shape index: {}]   ;;  %s4608_s13 = inlined_call_operand.hbm [shape: bf16[128,128], index: 13, kind: input, shape index: {}]   ;;  %s4609_s14 = inlined_call_operand.vmem [shape: f32[1,128], index: 14, kind: input, shape index: {}]   ;;  %s4610_s15 = inlined_call_operand.hbm [shape: bf16[128,896], index: 15, kind: input, shape index: {}]   ;;  %s4611_s16 = inlined_call_operand.vmem [shape: f32[1,896], index: 16, kind: input, shape index: {}]   ;;  %s4612_s17 = inlined_call_operand.hbm [shape: bf16[16,128], index: 17, kind: output, shape index: {0}]   ;;  %s4613_s18 = inlined_call_operand.hbm [shape: bf16[16,896], index: 18, kind: output, shape index: {1}]  }
   0x1   :  { %4622 = sst [smem:[#allocation27_spill]] %s4595_s0 }
   0x2   :  { %4623 = sst [smem:[#allocation28_spill]] %s4596_s1 }
   0x3   :  { %4624 = sst [smem:[#allocation29_spill]] %s4597_s2 }
   0x4   :  { %4625 = sst [smem:[#allocation30_spill]] %s4598_s3 }
   0x5   :  { %4626 = sst [smem:[#allocation31_spill]] %s4600_s5 }
   0x6   :  { %4627 = sst [smem:[#allocation32_spill]] %s4601_s6 }
   0x7   :  { %4628 = sst [smem:[#allocation33_spill]] %s4603_s8 }
   0x8   :  { %4629 = sst [smem:[#allocation34_spill]] %s4605_s10 }
   0x9   :  { %4630 = sst [smem:[#allocation35_spill]] %s4607_s12 }
   0xa   :  { %4631 = sst [smem:[#allocation36_spill]] %s4609_s14 }
   0xb   :  { %4632 = sst [smem:[#allocation37_spill]] %s4611_s16 }
   0xc   :  { %4633 = sst [smem:[#allocation38_spill]] %s4612_s17 }
   0xd   :  { %4634 = sst [smem:[#allocation39_spill]] %s4613_s18 }
   0xe   :  { %24 = vsyncpa [#allocation3], 0 }
   0xf   :  { %26 = vsyncpa [#allocation3 + $0x1], 0 }
  0x10   :  { %27 = vsyncpa [#allocation6], 0 }
  0x11   :  { %28 = vsyncpa [#allocation9], 0 }
  0x12   :  { %29 = vsyncpa [#allocation12], 0 }
  0x13   :  { %30 = vsyncpa [#allocation15], 0 }
  0x14   :  { %31 = vsyncpa [#allocation4], 0 }
  0x15   :  { %33 = vsyncpa [#allocation4 + $0x1], 0 }
  0x16   :  { %34 = vsyncpa [#allocation19], 0 }
  0x17   :  { %36 = vsyncpa [#allocation19 + $0x1], 0  ;;  %s4084_s27 = smov 0   ;;  %s4086_s28 = smov 0  }
  0x18   :  { %s4088_s29 = smov 0   ;;  %s4090_s30 = smov 0  }
  0x19 LB: > { %s3971_s0 = smov [#allocation5]   ;;  %s4105_s1 = sadd.s32 4294967295, %s3969_s30   ;;  %s3969_s30 = sphi %s4090_s30, %s4671_s30   ;;  %s3965_s29 = sphi %s4088_s29, %s4670_s29   ;;  %s3961_s28 = sphi %s4086_s28, %s4669_s28   ;;  %s3957_s27 = sphi %s4084_s27, %s4668_s27  }
  0x1a   : > { %s473_s19 = sshll.u32 %s3971_s0, 4  ;;  %p2795_p0 = scmp.ge.s32.totalorder %s3969_s30, 1  ;;  %s4110_s19 = int_to_ptr.vmem [resolvable:$true] %s473_s19 }
  0x1b   : > { %p4619_p1 = scmp.eq.s32.totalorder %s4105_s1, 0  ;;  %p461_p2 = scmp.lt.s32.totalorder %s3969_s30, 3 }
  0x1c   : > { %s3972_s21 = smov [#allocation8]   ;;  %s3973_s23 = smov [#allocation11]  }
  0x1d   : > { %p4112_p3 = pnand %p2795_p0, %p461_p2  ;;  %s505_s22 = sshll.u32 %s3972_s21, 4  ;;  %s4125_s22 = int_to_ptr.vmem [resolvable:$true] %s505_s22 }
  0x1e   : > { %s537_s24 = sshll.u32 %s3973_s23, 4  ;;  %s4637_s0 = sld [smem:[#allocation28_spill]]  ;;  %s4127_s24 = int_to_ptr.vmem [resolvable:$true] %s537_s24 }
  0x1f   : > { %s4635_s20 = scalar_select %p4112_p3, 1, 0 }
  0x20   : > { %p3316_p5 = pneg %p4112_p3 }
  0x22   : > { %p4121_p6 = pnand %p3316_p5, %p4619_p1 }
  0x24   : > { %s3601_s18 = scalar_lea.hbm %s4637_s0, 6272  ;;  %p4137_p8 = pneg %p4121_p6 }
  0x25   : > { %p3602_p7 = scmp.ne.s32.totalorder %s4637_s0, %s3601_s18  ;;  %p3608_p11 = scmp.lt.u32.totalorder %s3601_s18, %s4637_s0 }
  0x27   : > { %p3604_p9 = pnand %p4137_p8, %p3602_p7 }
  0x29   : > { %p3605_p10 = pneg %p3604_p9 }
  0x2b   : > { %p3610_p12 = pnand %p3608_p11, %p3605_p10 }
  0x2d   : > { %3613 = shalt.err (!%p3610_p12)
}
  0x2e   : > { %s3614_s16 = scalar_lea.vmem %s4110_s19, 6272  ;;  %p3622_p5 = scmp.lt.s32.totalorder %s4110_s19, %s4110_s19 }
  0x2f   : > { %p3615_p13 = scmp.ne.s32.totalorder %s4110_s19, %s3614_s16  ;;  %p3623_p4 = scmp.lt.s32.totalorder %s3614_s16, %s3614_s16 }
  0x31   : > { %p3617_p0 = pnand %p3615_p13, %p4137_p8  ;;  %p3624_p7 = por %p3623_p4, %p3622_p5 }
  0x33   : > { %p3618_p2 = pneg %p3617_p0 }
  0x35   : > { %p3625_p9 = pnand %p3624_p7, %p3618_p2 }
  0x37   : > { %3628 = shalt.err (!%p3625_p9)
}
  0x38   : > { %s3974_s17 = smov 64   ;;  %s3975_s14 = smov 4  }
  0x39   : > { %3319 = dma.hbm_to_vmem [thread:$0]  (!%p4121_p6), %s4637_s0, 6272, %s4110_s19, [#allocation6], %s3974_s17, %s3974_s17, %s3975_s14  }
  0x3a   : > { %s4639_s5 = sld [smem:[#allocation31_spill]] }
  0x40   : > { %s3629_s16 = scalar_lea.hbm %s4639_s5, 1024 }
  0x41   : > { %p3630_p4 = scmp.ne.s32.totalorder %s4639_s5, %s3629_s16  ;;  %p3636_p12 = scmp.lt.u32.totalorder %s3629_s16, %s4639_s5 }
  0x43   : > { %p3632_p10 = pnand %p3630_p4, %p4137_p8 }
  0x45   : > { %p3633_p11 = pneg %p3632_p10 }
  0x47   : > { %p3638_p13 = pnand %p3636_p12, %p3633_p11 }
  0x49   : > { %3641 = shalt.err (!%p3638_p13)
}
  0x4a   : > { %s3642_s19 = scalar_lea.vmem %s4125_s22, 1024  ;;  %p3650_p7 = scmp.lt.s32.totalorder %s4125_s22, %s4125_s22 }
  0x4b   : > { %p3643_p0 = scmp.ne.s32.totalorder %s4125_s22, %s3642_s19  ;;  %p3651_p9 = scmp.lt.s32.totalorder %s3642_s19, %s3642_s19 }
  0x4d   : > { %p3645_p2 = pnand %p3643_p0, %p4137_p8  ;;  %p3652_p4 = por %p3651_p9, %p3650_p7 }
  0x4f   : > { %p3646_p5 = pneg %p3645_p2 }
  0x51   : > { %p3653_p10 = pnand %p3652_p4, %p3646_p5 }
  0x53   : > { %3656 = shalt.err (!%p3653_p10)
}
  0x54   : > { %3325 = dma.hbm_to_vmem [thread:$0]  (!%p4121_p6), %s4639_s5, 1024, %s4125_s22, [#allocation9], %s3974_s17, %s3974_s17, %s3975_s14  }
  0x55   : > { %s3657_s18 = scalar_lea.hbm %s4604_s9, 1024 }
  0x56   : > { %p3658_p11 = scmp.ne.s32.totalorder %s4604_s9, %s3657_s18  ;;  %p3664_p0 = scmp.lt.u32.totalorder %s3657_s18, %s4604_s9 }
  0x58   : > { %p3660_p12 = pnand %p3658_p11, %p4137_p8 }
  0x5a   : > { %p3661_p13 = pneg %p3660_p12 }
  0x5c   : > { %p3666_p2 = pnand %p3664_p0, %p3661_p13 }
  0x5e   : > { %3669 = shalt.err (!%p3666_p2)
}
  0x5f   : > { %s3670_s22 = scalar_lea.vmem %s4127_s24, 1024  ;;  %p3678_p4 = scmp.lt.s32.totalorder %s4127_s24, %s4127_s24 }
  0x60   : > { %p3671_p5 = scmp.ne.s32.totalorder %s4127_s24, %s3670_s22  ;;  %p3679_p10 = scmp.lt.s32.totalorder %s3670_s22, %s3670_s22 }
  0x62   : > { %p3673_p7 = pnand %p3671_p5, %p4137_p8  ;;  %p3680_p11 = por %p3679_p10, %p3678_p4 }
  0x64   : > { %p3674_p9 = pneg %p3673_p7 }
  0x66   : > { %p3681_p12 = pnand %p3680_p11, %p3674_p9 }
  0x68   : > { %3684 = shalt.err (!%p3681_p12)
}
  0x69   : > { %3331 = dma.hbm_to_vmem [thread:$0]  (!%p4121_p6), %s4604_s9, 1024, %s4127_s24, [#allocation12], %s3974_s17, %s3974_s17, %s3975_s14  }
  0x6a   : > { %s3976_s8 = smov [#allocation14]   ;;  %s3977_s12 = smov [#allocation7]  }
  0x6b   : > { %s569_s10 = sshll.u32 %s3976_s8, 4  ;;  %s489_s18 = sshll.u32 %s3977_s12, 4  ;;  %s570_s10 = int_to_ptr.vmem [resolvable:$true] %s569_s10  ;;  %s490_s18 = int_to_ptr.vmem [resolvable:$true] %s489_s18 }
  0x6c   : > { %s3685_s23 = scalar_lea.hbm %s4608_s13, 1024 }
  0x6d   : > { %p3686_p13 = scmp.ne.s32.totalorder %s4608_s13, %s3685_s23  ;;  %p3692_p5 = scmp.lt.u32.totalorder %s3685_s23, %s4608_s13 }
  0x6f   : > { %p3688_p0 = pnand %p3686_p13, %p4137_p8 }
  0x71   : > { %p3689_p2 = pneg %p3688_p0 }
  0x73   : > { %p3694_p7 = pnand %p3692_p5, %p3689_p2 }
  0x75   : > { %3697 = shalt.err (!%p3694_p7)
}
  0x76   : > { %s3698_s24 = scalar_lea.vmem %s570_s10, 1024  ;;  %p3706_p11 = scmp.lt.s32.totalorder %s570_s10, %s570_s10 }
  0x77   : > { %p3699_p9 = scmp.ne.s32.totalorder %s570_s10, %s3698_s24  ;;  %p3707_p12 = scmp.lt.s32.totalorder %s3698_s24, %s3698_s24 }
  0x79   : > { %p3701_p4 = pnand %p3699_p9, %p4137_p8  ;;  %p3708_p1 = por %p3707_p12, %p3706_p11 }
  0x7b   : > { %p3702_p10 = pneg %p3701_p4 }
  0x7d   : > { %p3709_p3 = pnand %p3708_p1, %p3702_p10 }
  0x7f   : > { %3712 = shalt.err (!%p3709_p3)
}
  0x80   : > { %3337 = dma.hbm_to_vmem [thread:$0]  (!%p4121_p6), %s4608_s13, 1024, %s570_s10, [#allocation15], %s3974_s17, %s3974_s17, %s3975_s14  }
  0x81   : > { %s4640_s3 = sld [smem:[#allocation30_spill]] }
  0x87   : > { %s3713_s25 = scalar_lea.hbm %s4640_s3, 1024 }
  0x88   : > { %p3714_p1 = scmp.ne.s32.totalorder %s4640_s3, %s3713_s25  ;;  %p3720_p0 = scmp.lt.u32.totalorder %s3713_s25, %s4640_s3 }
  0x8a   : > { %p3716_p3 = pnand %p3714_p1, %p4137_p8 }
  0x8c   : > { %p3717_p13 = pneg %p3716_p3 }
  0x8e   : > { %p3722_p2 = pnand %p3720_p0, %p3717_p13 }
  0x90   : > { %3725 = shalt.err (!%p3722_p2)
}
  0x91   : > { %s3726_s19 = scalar_lea.vmem %s490_s18, 1024  ;;  %p3734_p4 = scmp.lt.s32.totalorder %s490_s18, %s490_s18 }
  0x92   : > { %p3727_p5 = scmp.ne.s32.totalorder %s490_s18, %s3726_s19  ;;  %p3735_p10 = scmp.lt.s32.totalorder %s3726_s19, %s3726_s19 }
  0x94   : > { %p3729_p7 = pnand %p3727_p5, %p4137_p8  ;;  %p3736_p11 = por %p3735_p10, %p3734_p4 }
  0x96   : > { %p3730_p9 = pneg %p3729_p7 }
  0x98   : > { %p3737_p12 = pnand %p3736_p11, %p3730_p9 }
  0x9a   : > { %3740 = shalt.err (!%p3737_p12)
}
  0x9b   : > { %3322 = dma.hbm_to_vmem [thread:$0]  (!%p4121_p6), %s4640_s3, 1024, %s490_s18, [#allocation6], %s3974_s17, %s3974_s17, %s3975_s14  }
  0x9c   : > { %s3978_s0 = smov [#allocation10]   ;;  %s3979_s8 = smov [#allocation13]  }
  0x9d   : > { %s521_s6 = sshll.u32 %s3978_s0, 4  ;;  %s553_s12 = sshll.u32 %s3979_s8, 4  ;;  %s522_s6 = int_to_ptr.vmem [resolvable:$true] %s521_s6  ;;  %s554_s12 = int_to_ptr.vmem [resolvable:$true] %s553_s12 }
  0x9e   : > { %s3741_s23 = scalar_lea.hbm %s4602_s7, 1024 }
  0x9f   : > { %p3742_p1 = scmp.ne.s32.totalorder %s4602_s7, %s3741_s23  ;;  %p3748_p0 = scmp.lt.u32.totalorder %s3741_s23, %s4602_s7 }
  0xa1   : > { %p3744_p3 = pnand %p3742_p1, %p4137_p8 }
  0xa3   : > { %p3745_p13 = pneg %p3744_p3 }
  0xa5   : > { %p3750_p2 = pnand %p3748_p0, %p3745_p13 }
  0xa7   : > { %3753 = shalt.err (!%p3750_p2)
}
  0xa8   : > { %s3754_s18 = scalar_lea.vmem %s522_s6, 1024  ;;  %p3762_p4 = scmp.lt.s32.totalorder %s522_s6, %s522_s6 }
  0xa9   : > { %p3755_p5 = scmp.ne.s32.totalorder %s522_s6, %s3754_s18  ;;  %p3763_p10 = scmp.lt.s32.totalorder %s3754_s18, %s3754_s18 }
  0xab   : > { %p3757_p7 = pnand %p3755_p5, %p4137_p8  ;;  %p3764_p11 = por %p3763_p10, %p3762_p4 }
  0xad   : > { %p3758_p9 = pneg %p3757_p7 }
  0xaf   : > { %p3765_p12 = pnand %p3764_p11, %p3758_p9 }
  0xb1   : > { %3768 = shalt.err (!%p3765_p12)
}
  0xb2   : > { %3328 = dma.hbm_to_vmem [thread:$0]  (!%p4121_p6), %s4602_s7, 1024, %s522_s6, [#allocation9], %s3974_s17, %s3974_s17, %s3975_s14  }
  0xb3   : > { %s3769_s26 = scalar_lea.hbm %s4606_s11, 1024 }
  0xb4   : > { %p3770_p1 = scmp.ne.s32.totalorder %s4606_s11, %s3769_s26  ;;  %p3776_p0 = scmp.lt.u32.totalorder %s3769_s26, %s4606_s11 }
  0xb6   : > { %p3772_p3 = pnand %p3770_p1, %p4137_p8 }
  0xb8   : > { %p3773_p13 = pneg %p3772_p3 }
  0xba   : > { %p3778_p2 = pnand %p3776_p0, %p3773_p13 }
  0xbc   : > { %3781 = shalt.err (!%p3778_p2)
}
  0xbd   : > { %s3782_s10 = scalar_lea.vmem %s554_s12, 1024  ;;  %p3790_p4 = scmp.lt.s32.totalorder %s554_s12, %s554_s12 }
  0xbe   : > { %p3783_p5 = scmp.ne.s32.totalorder %s554_s12, %s3782_s10  ;;  %p3791_p10 = scmp.lt.s32.totalorder %s3782_s10, %s3782_s10 }
  0xc0   : > { %p3785_p7 = pnand %p3783_p5, %p4137_p8  ;;  %p3792_p11 = por %p3791_p10, %p3790_p4 }
  0xc2   : > { %p3786_p9 = pneg %p3785_p7 }
  0xc4   : > { %p3793_p12 = pnand %p3792_p11, %p3786_p9 }
  0xc6   : > { %3796 = shalt.err (!%p3793_p12)
}
  0xc7   : > { %3334 = dma.hbm_to_vmem [thread:$0]  (!%p4121_p6), %s4606_s11, 1024, %s554_s12, [#allocation12], %s3974_s17, %s3974_s17, %s3975_s14  }
  0xc8   : > { %s3980_s24 = smov [#allocation16]   ;;  %s3797_s26 = scalar_lea.hbm %s4610_s15, 7168 }
  0xc9   : > { %s585_s0 = sshll.u32 %s3980_s24, 4  ;;  %p3798_p1 = scmp.ne.s32.totalorder %s4610_s15, %s3797_s26  ;;  %s586_s0 = int_to_ptr.vmem [resolvable:$true] %s585_s0 }
  0xca   : > { %p3804_p0 = scmp.lt.u32.totalorder %s3797_s26, %s4610_s15 }
  0xcb   : > { %p3800_p3 = pnand %p3798_p1, %p4137_p8 }
  0xcd   : > { %p3801_p13 = pneg %p3800_p3 }
  0xcf   : > { %p3806_p2 = pnand %p3804_p0, %p3801_p13 }
  0xd1   : > { %3809 = shalt.err (!%p3806_p2)
}
  0xd2   : > { %s3810_s17 = scalar_lea.vmem %s586_s0, 7168  ;;  %p3818_p4 = scmp.lt.s32.totalorder %s586_s0, %s586_s0 }
  0xd3   : > { %p3811_p5 = scmp.ne.s32.totalorder %s586_s0, %s3810_s17  ;;  %p3819_p10 = scmp.lt.s32.totalorder %s3810_s17, %s3810_s17 }
  0xd5   : > { %p3813_p7 = pnand %p3811_p5, %p4137_p8  ;;  %p3820_p11 = por %p3819_p10, %p3818_p4 }
  0xd7   : > { %p3814_p9 = pneg %p3813_p7 }
  0xd9   : > { %p3821_p12 = pnand %p3820_p11, %p3814_p9 }
  0xdb   : > { %3824 = shalt.err (!%p3821_p12)
}
  0xdc   : > { %s3981_s14 = smov 448   ;;  %s3982_s21 = smov 28  }
  0xdd   : > { %3340 = dma.hbm_to_vmem [thread:$0]  (!%p4121_p6), %s4610_s15, 7168, %s586_s0, [#allocation15], %s3981_s14, %s3981_s14, %s3982_s21  }
  0xde   : > { %s2794_s6 = sadd.s32 4294967294, %s3969_s30   ;;  %s4317_s18 = sadd.s32 1, %s3969_s30  }
  0xdf   : > { %s46_s24 = ssub.s32 %s3969_s30, %s4317_s18  ;;  %s49_s8 = sadd.s32 1, %s3965_s29 }
  0xe0   : > { %p47_p8 = scmp.eq.s32.totalorder %s46_s24, 0  ;;  %p56_p1 = scmp.ne.s32.totalorder %s3965_s29, %s3961_s28 }
  0xe1   : > { %p57_p3 = scmp.eq.s32.totalorder %s3969_s30, 0  ;;  %p62_p13 = scmp.ne.s32.totalorder %s3961_s28, %s3957_s27 }
  0xe2   : > { %s4328_s25 = scalar_select %p47_p8, %s3965_s29, %s49_s8  }
  0xe3   : > { %p58_p0 = por %p57_p3, %p56_p1  ;;  %p4641_p2 = scmp.eq.s32.totalorder %s4105_s1, 0 }
  0xe4   : > { %p422_p6 = scmp.eq.s32.totalorder %s4105_s1, 1  ;;  %p428_p7 = scmp.eq.s32.totalorder %s2794_s6, 1 }
  0xe5   : > { %p4332_p5 = por %p4641_p2, %p62_p13  ;;  %p3360_p9 = scmp.lt.s32.totalorder %s3969_s30, 2 }
  0xe6   : > { %s602_s0 = sand.u32 1, %s3965_s29   ;;  %p4339_p4 = por %p422_p6, %p56_p1 }
  0xe7   : > { %p4343_p10 = por %p428_p7, %p62_p13  ;;  %s3274_s16 = smul.u32 28, %s602_s0 }
  0xe8   : > { %s4643_s26 = scalar_select %p4339_p4, 1, 0 }
  0xe9   : > { %s4644_s23 = scalar_select %p4343_p10, 1, 0 }
  0xea   : > { %s3275_s22 = smul.u32 448, %s3969_s30  ;;  %p4348_p11 = pnand %p3360_p9, %p58_p0 }
  0xeb   : > { %s4646_s21 = sld [smem:[#allocation27_spill]]  ;;  %s606_s10 = scalar_lea.vmem [#allocation2], %s3274_s16 }
  0xec   : > { %s614_s6 = sshll.u32 %s606_s10, 4  ;;  %s603_s24 = scalar_lea.sflag [#allocation3], %s602_s0  ;;  %s4357_s6 = int_to_ptr.vmem [resolvable:$true] %s614_s6 }
  0xed   : > { %p3827_p8 = pneg %p4348_p11 }
  0xf1   : > { %s4355_s12 = scalar_lea.hbm %s4646_s21, %s3275_s22  ;;  %s3830_s14 = scalar_lea.hbm %s4646_s21, 896 }
  0xf2   : > { %s3825_s8 = scalar_lea.hbm %s4355_s12, 448  ;;  %p3831_p13 = scmp.lt.u32.totalorder %s4355_s12, %s4646_s21 }
  0xf3   : > { %p3826_p12 = scmp.ne.s32.totalorder %s4355_s12, %s3825_s8  ;;  %p3832_p0 = scmp.lt.u32.totalorder %s3830_s14, %s3825_s8 }
  0xf4   : > { %p3834_p6 = scmp.lt.u32.totalorder %s3825_s8, %s4355_s12 }
  0xf5   : > { %p3828_p1 = pnand %p3827_p8, %p3826_p12  ;;  %p3833_p2 = por %p3832_p0, %p3831_p13 }
  0xf7   : > { %p3829_p3 = pneg %p3828_p1  ;;  %p3835_p7 = por %p3834_p6, %p3833_p2 }
  0xf9   : > { %p3836_p9 = pnand %p3835_p7, %p3829_p3 }
  0xfb   : > { %3839 = shalt.err (!%p3836_p9)
}
  0xfc   : > { %s3840_s0 = scalar_lea.vmem %s4357_s6, 448  ;;  %s3983_s16 = smov [#allocation2]  }
  0xfd   : > { %p3841_p12 = scmp.ne.s32.totalorder %s4357_s6, %s3840_s0  ;;  %s3845_s10 = sshll.u32 %s3983_s16, 4  ;;  %s3846_s10 = int_to_ptr.vmem [resolvable:$false] %s3845_s10 }
  0xfe   : > { %s3847_s3 = scalar_lea.vmem %s3846_s10, 896  ;;  %p3848_p4 = scmp.lt.s32.totalorder %s4357_s6, %s3846_s10 }
  0xff   : > { %p3843_p1 = pnand %p3841_p12, %p3827_p8  ;;  %p3849_p13 = scmp.lt.s32.totalorder %s3847_s3, %s3840_s0 }
 0x101   : > { %p3844_p10 = pneg %p3843_p1  ;;  %p3850_p0 = por %p3849_p13, %p3848_p4 }
 0x103   : > { %p3851_p2 = pnand %p3850_p0, %p3844_p10 }
 0x105   : > { %3854 = shalt.err (!%p3851_p2)
}
 0x106   : > { %3344 = dma.hbm_to_vmem [thread:$0]  (!%p4348_p11), %s4355_s12, 448, %s4357_s6, %s603_s24  }
 0x107   : > { %p4647_p3 = scmp.ne.s32.totalorder %s4635_s20, 0 }
 0x108   : > { %s4387_s5 = sand.u32 (!%p4647_p3), 1, %s3961_s28  }
 0x109   : > { %623 = sbr.rel (%p4647_p3) target bundleno = 2144 (0x860), region = 88  ;;  %s626_s17 = scalar_lea.sflag (!%p4647_p3), [#allocation3], %s4387_s5 }
 0x10a   : > { %s3276_s8 = smul.u32 (!%p4647_p3), 28, %s4387_s5 }
 0x10c   : > { %s4393_s22 = scalar_lea.vmem (!%p4647_p3), [#allocation2], %s3276_s8 }
 0x110   : > { %3928 = dma.done.wait (%p4332_p5), %s626_s17, 448  }
 0x111   : > { %3930 = vsyncadd (%p4332_p5), %s626_s17, 4294966848  ;;  %p4648_p4 = scmp.eq.s32.totalorder %s4105_s1, 0 }
 0x113   : > { %3932 = dma.done.wait (%p4648_p4), [#allocation6], 7296   ;;  %p4649_p10 = pmov %p4648_p4 }
 0x114   : > { %p4650_p11 = pmov %p4648_p4 }
 0x115   : > { %3934 = vsyncadd (%p4649_p10), [#allocation6], 4294960000 }
 0x116   : > { %3936 = dma.done.wait (%p4650_p11), [#allocation9], 2048   ;;  %p4651_p8 = pmov %p4648_p4 }
 0x117   : > { %p4652_p6 = pmov %p4648_p4 }
 0x118   : > { %3938 = vsyncadd (%p4651_p8), [#allocation9], 4294965248 }
 0x119   : > { %3940 = dma.done.wait (%p4652_p6), [#allocation12], 2048   ;;  %p4653_p7 = pmov %p4648_p4 }
 0x11a   : > { %p4654_p5 = pmov %p4648_p4 }
 0x11b   : > { %3942 = vsyncadd (%p4653_p7), [#allocation12], 4294965248 }
 0x11c   : > { %3944 = dma.done.wait (%p4654_p5), [#allocation15], 8192   ;;  %p4655_p9 = pmov %p4648_p4 }
 0x11d   : > { %v3417_v0 = vld [vmem:[#allocation5 + $0x40] sm:$0xff]   ;;  %v3421_v4 = vld [vmem:[#allocation5 + $0x48] sm:$0xff]   ;;  %v3425_v8 = vld [vmem:[#allocation5 + $0x50] sm:$0xff]   ;;  %v3984_v43 = vmov 0.0   ;;  %vm3985_vm0 = vmmov 0   ;;  %vm1147_vm1 = vcmask 130048  }
 0x11e   : > { %3946 = vsyncadd (%p4655_p9), [#allocation15], 4294959104  ;;  %v3418_v1 = vld [vmem:[#allocation5] sm:$0xff]   ;;  %2997 = vmatprep.subr.bf16.mxu0 %v3417_v0  ;;  %v3422_v5 = vld [vmem:[#allocation5 + $0x8] sm:$0xff]   ;;  %s4656_s19 = sld [smem:[#allocation29_spill]]  ;;  %s4657_s0 = sld [smem:[#allocation32_spill]] }
 0x11f   : > { %v3419_v2 = vld [vmem:[#allocation5 + $0xc0] sm:$0xff]   ;;  %2998 = vmatpush3.bf16.msra.mxu0 %v3418_v1  ;;  %v3423_v6 = vld [vmem:[#allocation5 + $0xc8] sm:$0xff]   ;;  %v3426_v9 = vld [vmem:[#allocation5 + $0x10] sm:$0xff]   ;;  %s4658_s3 = sld [smem:[#allocation33_spill]]  ;;  %s2815_s17 = sshll.u32 %s4387_s5, 2 }
 0x120   : > { %v3420_v3 = vld [vmem:[#allocation5 + $0x80] sm:$0xff]   ;;  %3019 = vmatprep.subr.bf16.mxu1 %v3419_v2  ;;  %2999 = vmatprep.subr.bf16.mxu0 %v3421_v4  ;;  %v3424_v7 = vld [vmem:[#allocation5 + $0x88] sm:$0xff]   ;;  %v3427_v10 = vld [vmem:[#allocation5 + $0xd0] sm:$0xff]   ;;  %s4660_s24 = sld [smem:[#allocation35_spill]]  ;;  %s4661_s16 = sld [smem:[#allocation36_spill]] }
 0x121   : > { %3020 = vmatpush3.bf16.msra.mxu1 %v3420_v3  ;;  %v3428_v11 = vld [vmem:[#allocation5 + $0x90] sm:$0xff]   ;;  %v3429_v12 = vld [vmem:[#allocation5 + $0x58] sm:$0xff]   ;;  %v3433_v16 = vld [vmem:[#allocation5 + $0x60] sm:$0xff]   ;;  %s2989_s10 = sshll.u32 %s4105_s1, 6  ;;  %s4662_s2 = sld [smem:[#allocation38_spill]] }
 0x122   : > { %3021 = vmatprep.subr.bf16.mxu1 %v3423_v6  ;;  %v3430_v13 = vld [vmem:[#allocation5 + $0x18] sm:$0xff]   ;;  %v3434_v17 = vld [vmem:[#allocation5 + $0x20] sm:$0xff]   ;;  %v3437_v20 = vld [vmem:[#allocation5 + $0x68] sm:$0xff]   ;;  %s2584_s12 = scalar_lea.sflag [#allocation4], %s4387_s5  ;;  %p4663_p1 = scmp.ne.s32.totalorder %s4643_s26, 0 }
 0x123   : > { %3000 = vmatpush3.bf16.msra.mxu0 %v3422_v5  ;;  %v3431_v14 = vld [vmem:[#allocation5 + $0xd8] sm:$0xff]   ;;  %v3435_v18 = vld [vmem:[#allocation5 + $0xe0] sm:$0xff]   ;;  %v3438_v21 = vld [vmem:[#allocation5 + $0x28] sm:$0xff]  }
 0x124   : > { %3001 = vmatprep.subr.bf16.mxu0 %v3425_v8  ;;  %v3432_v15 = vld [vmem:[#allocation5 + $0x98] sm:$0xff]   ;;  %v3436_v19 = vld [vmem:[#allocation5 + $0xa0] sm:$0xff]   ;;  %v3439_v22 = vld [vmem:[#allocation5 + $0xe8] sm:$0xff]  }
 0x125   : > { %3022 = vmatpush3.bf16.msra.mxu1 %v3424_v7  ;;  %v3440_v23 = vld [vmem:[#allocation5 + $0xa8] sm:$0xff]   ;;  %v3441_v24 = vld [vmem:[#allocation5 + $0x70] sm:$0xff]   ;;  %v3445_v28 = vld [vmem:[#allocation5 + $0x78] sm:$0xff]  }
 0x126   : > { %3023 = vmatprep.subr.bf16.mxu1 %v3427_v10  ;;  %v3442_v25 = vld [vmem:[#allocation5 + $0x30] sm:$0xff]   ;;  %v3446_v29 = vld [vmem:[#allocation5 + $0x38] sm:$0xff]   ;;  %v720_v31 = vld [vmem:[%s4393_s22] sm:$0xff] }
 0x127   : > { %3002 = vmatpush3.bf16.msra.mxu0 %v3426_v9  ;;  %v3443_v26 = vld [vmem:[#allocation5 + $0xf0] sm:$0xff]   ;;  %v3447_v30 = vld [vmem:[#allocation5 + $0xf8] sm:$0xff]   ;;  %v2817_v32 = vcombine.low %v720_v31, %v720_v31  ;;  %v2818_v33 = vcombine.high %v720_v31, %v720_v31  ;;  %v3451_v35 = vld [vmem:[#allocation5 + $0x140] sm:$0xff]  }
 0x128   : > { %3003 = vmatprep.subr.bf16.mxu0 %v3429_v12  ;;  %v3444_v27 = vld [vmem:[#allocation5 + $0xb0] sm:$0xff]   ;;  %v3450_v34 = vld [vmem:[#allocation5 + $0xb8] sm:$0xff]   ;;  %v3454_v39 = vld [vmem:[#allocation5 + $0x100] sm:$0xff]  }
 0x129   : > { %3024 = vmatpush3.bf16.msra.mxu1 %v3428_v11  ;;  %v721_v36 = vld [vmem:[%s4393_s22 + $0x8] sm:$0xff]  ;;  %1183 = vmatprep.mubr.bf16.mxu0 %v2818_v33  ;;  %v3459_v45 = vld [vmem:[#allocation5 + $0x158] sm:$0xff]   ;;  %v3461_v47 = vld [vmem:[#allocation5 + $0x160] sm:$0xff]  }
 0x12a   : > { %3025 = vmatprep.subr.bf16.mxu1 %v3431_v14  ;;  %v2819_v37 = vcombine.low %v721_v36, %v721_v36  ;;  %v2820_v38 = vcombine.high %v721_v36, %v721_v36  ;;  %v3455_v40 = vld [vmem:[#allocation5 + $0x148] sm:$0xff]   ;;  %v3457_v42 = vld [vmem:[#allocation5 + $0x150] sm:$0xff]   ;;  %v3460_v46 = vld [vmem:[#allocation5 + $0x118] sm:$0xff]  }
 0x12b   : > { %3004 = vmatpush3.bf16.msra.mxu0 %v3430_v13  ;;  %v3456_v41 = vld [vmem:[#allocation5 + $0x108] sm:$0xff]   ;;  %v3458_v44 = vld [vmem:[#allocation5 + $0x110] sm:$0xff]   ;;  %v3462_v48 = vld [vmem:[#allocation5 + $0x120] sm:$0xff]  }
 0x12c   : > { %3005 = vmatprep.subr.bf16.mxu0 %v3433_v16  ;;  %1223 = vmatprep.mubr.bf16.mxu1 %v2820_v38  ;;  %v3463_v49 = vld [vmem:[#allocation5 + $0x168] sm:$0xff]   ;;  %v3469_v50 = vld [vmem:[#allocation5 + $0x180] sm:$0xff]   ;;  %v722_v51 = vld [vmem:[%s4393_s22 + $0x10] sm:$0xff] }
 0x12d   : > { %3026 = vmatpush3.bf16.msra.mxu1 %v3432_v15  ;;  %v3464_v52 = vld [vmem:[#allocation5 + $0x128] sm:$0xff]   ;;  %v2822_v53 = vcombine.high %v722_v51, %v722_v51  ;;  %v3472_v54 = vld [vmem:[%s4393_s22 + $0x18] ss:$0 sps:$4 sm:$0xff]   ;;  %v3465_v55 = vld [vmem:[#allocation5 + $0x170] sm:$0xff]   ;;  %v2821_v59 = vcombine.low %v722_v51, %v722_v51  ;;  %s4485_s22 = scalar_lea.vmem [#allocation17], %s2815_s17 }
 0x12e   : > { %3027 = vmatprep.subr.bf16.mxu1 %v3435_v18  ;;  %v3466_v56 = vld [vmem:[#allocation5 + $0x130] sm:$0xff]   ;;  %v3467_v57 = vld [vmem:[#allocation5 + $0x178] sm:$0xff]   ;;  %v3473_v60 = vld [vmem:[#allocation7] sm:$0xff]  }
 0x12f   : > { %3006 = vmatpush3.bf16.msra.mxu0 %v3434_v17  ;;  %v3468_v58 = vld [vmem:[#allocation5 + $0x138] sm:$0xff]   ;;  %v3474_v61 = vld [vmem:[#allocation7 + $0x8] sm:$0xff]   ;;  %v3476_v63 = vld [vmem:[#allocation7 + $0x18] sm:$0xff]  }
 0x130   : > { %3007 = vmatprep.subr.bf16.mxu0 %v3437_v20  ;;  %v3475_v62 = vld [vmem:[#allocation7 + $0x10] sm:$0xff]   ;;  %v3477_v0 = vld [vmem:[#allocation7 + $0x20] sm:$0xff]   ;;  %v3478_v1 = vld [vmem:[#allocation7 + $0x28] sm:$0xff]  }
 0x131   : > { %3028 = vmatpush3.bf16.msra.mxu1 %v3436_v19  ;;  %v3479_v2 = vld [vmem:[#allocation7 + $0x30] sm:$0xff]   ;;  %v3480_v3 = vld [vmem:[#allocation7 + $0x38] sm:$0xff]   ;;  %v3481_v4 = vld [vmem:[#allocation8] sm:$0xff]  }
 0x132   : > { %3029 = vmatprep.subr.bf16.mxu1 %v3439_v22  ;;  %v3482_v5 = vld [vmem:[#allocation8 + $0x8] sm:$0xff]   ;;  %v3483_v6 = vld [vmem:[#allocation8 + $0x10] sm:$0xff]   ;;  %v3484_v7 = vld [vmem:[#allocation8 + $0x18] sm:$0xff]  }
 0x133   : > { %3008 = vmatpush3.bf16.msra.mxu0 %v3438_v21  ;;  %v3485_v8 = vld [vmem:[#allocation8 + $0x20] sm:$0xff]   ;;  %v3486_v9 = vld [vmem:[#allocation8 + $0x28] sm:$0xff]   ;;  %v3487_v36 = vld [vmem:[#allocation8 + $0x30] sm:$0xff]  }
 0x134   : > { %3009 = vmatprep.subr.bf16.mxu0 %v3441_v24  ;;  %v2816_v11 = vld [vmem:[%s4656_s19] ss:$0 sm:$0xff]  ;;  %s4659_s19 = sld [smem:[#allocation34_spill]] }
 0x135   : > { %3030 = vmatpush3.bf16.msra.mxu1 %v3440_v23  ;;  %v3489_v38 = vld [vmem:[#allocation10] sm:$0xff]  }
 0x136   : > { %3031 = vmatprep.subr.bf16.mxu1 %v3443_v26 }
 0x137   : > { %3010 = vmatpush3.bf16.msra.mxu0 %v3442_v25 }
 0x138   : > { %3011 = vmatprep.subr.bf16.mxu0 %v3445_v28 }
 0x139   : > { %3032 = vmatpush3.bf16.msra.mxu1 %v3444_v27 }
 0x13a   : > { %3033 = vmatprep.subr.bf16.mxu1 %v3447_v30 }
 0x13b   : > { %3012 = vmatpush3.bf16.msra.mxu0 %v3446_v29 }
 0x13c   : > { %3041 = vmatprep.subr.bf16.mxu0 %v3451_v35 }
 0x13d   : > { %3034 = vmatpush3.bf16.msra.mxu1 %v3450_v34 }
 0x13e   : > { %1184 = vmatmul.mubr.bf16.vlgmr.msra.gmra.mrb[0].mxu0 %v2817_v32  ;;  %3128 = vmatprep.subr.bf16.mxu1 %v3984_v43 }
 0x13f   : > { %3042 = vmatpush3.bf16.msra.mxu0 %v3454_v39  ;;  %1263 = vmatprep.mubr.bf16.mxu0 %v2822_v53  ;;  %v3490_v39 = vld [vmem:[#allocation10 + $0x8] sm:$0xff]   ;;  %v3495_v53 = vld [vmem:[#allocation10 + $0x30] sm:$0xff]  }
 0x140   : > { %1224 = vmatmul.mubr.bf16.vlgmr.msra.gmra.mrb[0].mxu1 %v2819_v37  ;;  %3043 = vmatprep.subr.bf16.mxu0 %v3455_v40  ;;  %v3488_v37 = vld [vmem:[#allocation8 + $0x38] sm:$0xff]   ;;  %v3491_v40 = vld [vmem:[#allocation10 + $0x10] sm:$0xff]  }
 0x141   : > { %3130 = vmatprep.mubr.msk.bf16.mxu1 %vm3985_vm0, %v3984_v43  ;;  %3129 = vmatpush3.bf16.msra.mxu1 %v3469_v50 }
 0x142   : > { %3134 = vmatprep.subr.bf16.mxu1 %v3984_v43 }
 0x143   : > { %3044 = vmatpush3.bf16.msra.mxu0 %v3456_v41  ;;  %v3492_v41 = vld [vmem:[#allocation10 + $0x18] sm:$0xff]  }
 0x144   : > { %3045 = vmatprep.subr.bf16.mxu0 %v3457_v42  ;;  %v3493_v42 = vld [vmem:[#allocation10 + $0x20] sm:$0xff]  }
 0x147   : > { %3046 = vmatpush3.bf16.msra.mxu0 %v3458_v44  ;;  %v3494_v44 = vld [vmem:[#allocation10 + $0x28] sm:$0xff]  }
 0x148   : > { %3047 = vmatprep.subr.bf16.mxu0 %v3459_v45  ;;  %3131 = vmatmul.mubr.msk.bf16.vlgmr.msra.gmra.mrb[4].mxu1 %vm1147_vm1, %v3472_v54  ;;  %v2874_v45 = vld [vmem:[%s4599_s4] ss:$0 sm:$0xff]  ;;  %v3496_v54 = vld [vmem:[#allocation10 + $0x38] sm:$0xff]  }
 0x149   : > { %3150 = vmatprep.mubr.msk.bf16.mxu1 %vm3985_vm0, %v3984_v43  ;;  %3135 = vmatpush3.bf16.msra.mxu1 %v3473_v60  ;;  %v3502_v60 = vld [vmem:[#allocation11 + $0x28] sm:$0xff]  }
 0x14a   : > { %3136 = vmatprep.subr.bf16.mxu1 %v3984_v43 }
 0x14b   : > { %3048 = vmatpush3.bf16.msra.mxu0 %v3460_v46 }
 0x14c   : > { %3049 = vmatprep.subr.bf16.mxu0 %v3461_v47 }
 0x14d   : > { %3137 = vmatpush3.bf16.msra.mxu1 %v3474_v61  ;;  %v3503_v61 = vld [vmem:[#allocation11 + $0x30] sm:$0xff]  }
 0x14e   : > { %3138 = vmatprep.subr.bf16.mxu1 %v3984_v43 }
 0x14f   : > { %3050 = vmatpush3.bf16.msra.mxu0 %v3462_v48 }
 0x150   : > { %3051 = vmatprep.subr.bf16.mxu0 %v3463_v49 }
 0x151   : > { %3139 = vmatpush3.bf16.msra.mxu1 %v3475_v62  ;;  %v2883_v62 = vld [vmem:[%s4657_s0] ss:$0 sm:$0xff] }
 0x152   : > { %3140 = vmatprep.subr.bf16.mxu1 %v3984_v43 }
 0x153   : > { %3052 = vmatpush3.bf16.msra.mxu0 %v3464_v52 }
 0x154   : > { %3053 = vmatprep.subr.bf16.mxu0 %v3465_v55  ;;  %v3497_v55 = vld [vmem:[#allocation11] sm:$0xff]  }
 0x155   : > { %3141 = vmatpush3.bf16.msra.mxu1 %v3476_v63 }
 0x156   : > { %3142 = vmatprep.subr.bf16.mxu1 %v3984_v43 }
 0x157   : > { %3054 = vmatpush3.bf16.msra.mxu0 %v3466_v56  ;;  %v3498_v56 = vld [vmem:[#allocation11 + $0x8] sm:$0xff]  }
 0x158   : > { %3055 = vmatprep.subr.bf16.mxu0 %v3467_v57  ;;  %v3499_v57 = vld [vmem:[#allocation11 + $0x10] sm:$0xff]  }
 0x159   : > { %3143 = vmatpush3.bf16.msra.mxu1 %v3477_v0 }
 0x15a   : > { %3144 = vmatprep.subr.bf16.mxu1 %v3984_v43 }
 0x15b   : > { %3056 = vmatpush3.bf16.msra.mxu0 %v3468_v58  ;;  %v3500_v58 = vld [vmem:[#allocation11 + $0x18] sm:$0xff]  }
 0x15c   : > { %3154 = vmatprep.subr.bf16.mxu0 %v3984_v43 }
 0x15d   : > { %3145 = vmatpush3.bf16.msra.mxu1 %v3478_v1 }
 0x15e   : > { %1264 = vmatmul.mubr.bf16.vlgmr.msra.gmra.mrb[4].mxu0 %v2821_v59  ;;  %3146 = vmatprep.subr.bf16.mxu1 %v3984_v43  ;;  %v3501_v59 = vld [vmem:[#allocation11 + $0x20] sm:$0xff]  }
 0x15f   : > { %3170 = vmatprep.mubr.msk.bf16.mxu0 %vm3985_vm0, %v3984_v43  ;;  %3155 = vmatpush3.bf16.msra.mxu0 %v3481_v4 }
 0x160   : > { %3156 = vmatprep.subr.bf16.mxu0 %v3984_v43 }
 0x161   : > { %3147 = vmatpush3.bf16.msra.mxu1 %v3479_v2 }
 0x162   : > { %3148 = vmatprep.subr.bf16.mxu1 %v3984_v43 }
 0x163   : > { %3157 = vmatpush3.bf16.msra.mxu0 %v3482_v5 }
 0x164   : > { %3158 = vmatprep.subr.bf16.mxu0 %v3984_v43 }
 0x165   : > { %3149 = vmatpush3.bf16.msra.mxu1 %v3480_v3 }
 0x166   : > { %3174 = vmatprep.subr.bf16.mxu1 %v3984_v43 }
 0x167   : > { %3159 = vmatpush3.bf16.msra.mxu0 %v3483_v6  ;;  %v3504_v6 = vld [vmem:[#allocation11 + $0x38] sm:$0xff]  }
 0x168   : > { %3160 = vmatprep.subr.bf16.mxu0 %v3984_v43 }
 0x16b   : > { %3161 = vmatpush3.bf16.msra.mxu0 %v3484_v7  ;;  %v3505_v7 = vld [vmem:[#allocation13] sm:$0xff]  }
 0x16c   : > { %3162 = vmatprep.subr.bf16.mxu0 %v3984_v43 }
 0x16f   : > { %3163 = vmatpush3.bf16.msra.mxu0 %v3485_v8  ;;  %v3506_v8 = vld [vmem:[#allocation13 + $0x8] sm:$0xff]  }
 0x170   : > { %3164 = vmatprep.subr.bf16.mxu0 %v3984_v43 }
 0x173   : > { %3165 = vmatpush3.bf16.msra.mxu0 %v3486_v9  ;;  %v3507_v9 = vld [vmem:[#allocation13 + $0x10] sm:$0xff]  }
 0x174   : > { %3166 = vmatprep.subr.bf16.mxu0 %v3984_v43 }
 0x177   : > { %3167 = vmatpush3.bf16.msra.mxu0 %v3487_v36  ;;  %v3519_v36 = vld [vmem:[#allocation14 + $0x30] sm:$0xff]  }
 0x178   : > { %3168 = vmatprep.subr.bf16.mxu0 %v3984_v43 }
 0x17b   : > { %3169 = vmatpush3.bf16.msra.mxu0 %v3488_v37  ;;  %v3520_v37 = vld [vmem:[#allocation14 + $0x38] sm:$0xff]  }
 0x17c   : > { %3194 = vmatprep.subr.bf16.mxu0 %v3984_v43 }
 0x211   : > { %v3013_v10 = vpop.f32.mrb[0].mxu0 }
 0x212   : > { %v3014_v12 = vpop.f32.mrb[1].mxu0 }
 0x213   : > { %v3015_v13 = vadd.f32 %v3014_v12, %v3013_v10  ;;  %v3016_v14 = vpop.f32.mrb[2].mxu0  ;;  %v3035_v15 = vpop.f32.mrb[0].mxu1  ;;  %v3508_v10 = vld [vmem:[#allocation13 + $0x18] sm:$0xff]   ;;  %v3510_v12 = vld [vmem:[#allocation13 + $0x28] sm:$0xff]  }
 0x214   : > { %v3017_v16 = vpop.f32.mrb[3].mxu0  ;;  %v3036_v17 = vpop.f32.mrb[1].mxu1 }
 0x215   : > { %v1186_v18 = vadd.f32 %v3015_v13, %v2816_v11  ;;  %v3037_v19 = vadd.f32 %v3036_v17, %v3035_v15  ;;  %v3038_v20 = vpop.f32.mrb[2].mxu1  ;;  %v3509_v11 = vld [vmem:[#allocation13 + $0x20] sm:$0xff]  }
 0x216   : > { %v3039_v21 = vpop.f32.mrb[3].mxu1  ;;  %v2892_v13 = vld [vmem:[%s4658_s3] ss:$0 sm:$0xff]  ;;  %v3511_v20 = vld [vmem:[#allocation13 + $0x30] sm:$0xff]   ;;  %s2602_s3 = sshll.u32 %s4485_s22, 4  ;;  %s2603_s3 = int_to_ptr.vmem [resolvable:$true] %s2602_s3 }
 0x217   : > { %v1226_v22 = vadd.f32 %v3037_v19, %v1186_v18  ;;  %v3512_v21 = vld [vmem:[#allocation13 + $0x38] sm:$0xff]   ;;  %s3855_s6 = scalar_lea.vmem %s2603_s3, 64 }
 0x218   : > { %p3856_p12 = scmp.ne.s32.totalorder %s2603_s3, %s3855_s6 }
 0x21a   : > { %p3857_p13 = pnand %p3856_p12, %p4663_p1 }
 0x21b   : > { %v1305_v23 = vpop.f32.mrb[4].mxu1 }
 0x21c   : > { %v3132_v24 = vpop.f32.mrb[5].mxu1  ;;  %p3858_p0 = pneg %p3857_p13 }
 0x21d   : > { %v1308_v25 = vpop.f32.mrb[6].mxu1  ;;  %v3515_v24 = vld [vmem:[#allocation14 + $0x10] sm:$0xff]  }
 0x21e   : > { %v3133_v26 = vpop.f32.mrb[7].mxu1  ;;  %v3516_v25 = vld [vmem:[#allocation14 + $0x18] sm:$0xff]  }
 0x21f   : > { %v3517_v26 = vld [vmem:[#allocation14 + $0x20] sm:$0xff]  }
 0x231   : > { %v3057_v27 = vpop.f32.mrb[4].mxu0 }
 0x232   : > { %v3058_v28 = vpop.f32.mrb[5].mxu0 }
 0x233   : > { %v3059_v29 = vadd.f32 %v3058_v28, %v3057_v27  ;;  %v3060_v30 = vpop.f32.mrb[6].mxu0  ;;  %v3518_v27 = vld [vmem:[#allocation14 + $0x28] sm:$0xff]   ;;  %v2901_v28 = vld [vmem:[%s4659_s19] ss:$0 sm:$0xff]  ;;  %s4522_s19 = scalar_lea.hbm %s4662_s2, %s2989_s10 }
 0x234   : > { %v3061_v31 = vpop.f32.mrb[7].mxu0 }
 0x235   : > { %v1266_v32 = vadd.f32 %v3059_v29, %v1226_v22  ;;  %v3513_v22 = vld [vmem:[#allocation14] sm:$0xff]  }
 0x237   : > { %v1306_v33 = vadd.f32 %v1305_v23, %v1266_v32  ;;  %v3514_v23 = vld [vmem:[#allocation14 + $0x8] sm:$0xff]  }
 0x239   : > { %v1311_v34 = vmax.f32 %v1306_v33, 0.0 }
 0x23b   : > { %v1312_v35 = vpack.c.bf16 %v1311_v34, %v1311_v34 }
 0x23d   : > { %3151 = vmatmul.mubr.bf16.vlgmr.msra.gmra.mrb[8].mxu1 %v1312_v35 }
 0x23e   : > { %3190 = vmatprep.mubr.msk.bf16.mxu1 %vm3985_vm0, %v3984_v43  ;;  %3175 = vmatpush3.bf16.msra.mxu1 %v3489_v38  ;;  %v3521_v38 = vld [vmem:[#allocation16] ss:$28 sps:$4 sm:$0xff]  }
 0x23f   : > { %3176 = vmatprep.subr.bf16.mxu1 %v3984_v43 }
 0x242   : > { %3177 = vmatpush3.bf16.msra.mxu1 %v3490_v39  ;;  %v3523_v39 = vld [vmem:[#allocation16 + $0x4] ss:$28 sps:$4 sm:$0xff]  }
 0x243   : > { %3178 = vmatprep.subr.bf16.mxu1 %v3984_v43 }
 0x246   : > { %3179 = vmatpush3.bf16.msra.mxu1 %v3491_v40  ;;  %v3526_v40 = vld [vmem:[#allocation16 + $0xc] ss:$28 sps:$4 sm:$0xff]  }
 0x247   : > { %3180 = vmatprep.subr.bf16.mxu1 %v3984_v43 }
 0x24a   : > { %3181 = vmatpush3.bf16.msra.mxu1 %v3492_v41  ;;  %v3529_v41 = vld [vmem:[#allocation16 + $0x3c] ss:$28 sps:$4 sm:$0xff]  }
 0x24b   : > { %3182 = vmatprep.subr.bf16.mxu1 %v3984_v43 }
 0x24e   : > { %3183 = vmatpush3.bf16.msra.mxu1 %v3493_v42  ;;  %v3527_v42 = vld [vmem:[#allocation16 + $0x38] ss:$28 sps:$4 sm:$0xff]  }
 0x24f   : > { %3184 = vmatprep.subr.bf16.mxu1 %v3984_v43 }
 0x252   : > { %3185 = vmatpush3.bf16.msra.mxu1 %v3494_v44  ;;  %v3535_v44 = vld [vmem:[#allocation16 + $0x74] ss:$28 sps:$4 sm:$0xff]  }
 0x253   : > { %3186 = vmatprep.subr.bf16.mxu1 %v3984_v43 }
 0x256   : > { %3187 = vmatpush3.bf16.msra.mxu1 %v3495_v53  ;;  %v3557_v53 = vld [vmem:[#allocation16 + $0x150] ss:$28 sps:$4 sm:$0xff]  }
 0x257   : > { %3188 = vmatprep.subr.bf16.mxu1 %v3984_v43 }
 0x25a   : > { %3189 = vmatpush3.bf16.msra.mxu1 %v3496_v54  ;;  %v2910_v54 = vld [vmem:[%s4660_s24] ss:$0 sm:$0xff]  ;;  %s3987_s24 = smov [#allocation17]  }
 0x25b   : > { %3214 = vmatprep.subr.bf16.mxu1 %v3984_v43  ;;  %s3859_s14 = sshll.u32 %s3987_s24, 4  ;;  %s3860_s14 = int_to_ptr.vmem [resolvable:$false] %s3859_s14 }
 0x25c   : > { %s3861_s0 = scalar_lea.vmem %s3860_s14, 128  ;;  %p3862_p2 = scmp.lt.s32.totalorder %s2603_s3, %s3860_s14 }
 0x25d   : > { %p3863_p3 = scmp.lt.s32.totalorder %s3861_s0, %s3855_s6 }
 0x25f   : > { %p3864_p4 = por %p3863_p3, %p3862_p2 }
 0x261   : > { %p3865_p10 = pnand %p3864_p4, %p3858_p0 }
 0x310   : > { %v1418_v46 = vpop.f32.mrb[8].mxu1 }
 0x311   : > { %v1419_v47 = vadd.f32 %v2874_v45, %v1418_v46  ;;  %v3152_v48 = vpop.f32.mrb[9].mxu1  ;;  %v3533_v45 = vld [vmem:[#allocation16 + $0x70] ss:$28 sps:$4 sm:$0xff]  }
 0x312   : > { %v1421_v49 = vpop.f32.mrb[10].mxu1  ;;  %v3541_v46 = vld [vmem:[#allocation16 + $0xac] ss:$28 sps:$4 sm:$0xff]   ;;  %v3547_v48 = vld [vmem:[#allocation16 + $0xe4] ss:$28 sps:$4 sm:$0xff]  }
 0x313   : > { %v1424_v50 = vmax.f32 %v1419_v47, 0.0  ;;  %v3153_v51 = vpop.f32.mrb[11].mxu1  ;;  %v3539_v47 = vld [vmem:[#allocation16 + $0xa8] ss:$28 sps:$4 sm:$0xff]   ;;  %v3545_v49 = vld [vmem:[#allocation16 + $0xe0] ss:$28 sps:$4 sm:$0xff]  }
 0x314   : > { %v3551_v51 = vld [vmem:[#allocation16 + $0x118] ss:$28 sps:$4 sm:$0xff]  }
 0x315   : > { %v1425_v52 = vpack.c.bf16 %v1424_v50, %v1424_v50  ;;  %v3553_v50 = vld [vmem:[#allocation16 + $0x11c] ss:$28 sps:$4 sm:$0xff]  }
 0x317   : > { %3171 = vmatmul.mubr.bf16.vlgmr.msra.gmra.mrb[8].mxu0 %v1425_v52  ;;  %v3559_v52 = vld [vmem:[#allocation16 + $0x154] ss:$28 sps:$4 sm:$0xff]  }
 0x318   : > { %3210 = vmatprep.mubr.msk.bf16.mxu0 %vm3985_vm0, %v3984_v43  ;;  %3195 = vmatpush3.bf16.msra.mxu0 %v3497_v55 }
 0x319   : > { %3196 = vmatprep.subr.bf16.mxu0 %v3984_v43 }
 0x31c   : > { %3197 = vmatpush3.bf16.msra.mxu0 %v3498_v56 }
 0x31d   : > { %3198 = vmatprep.subr.bf16.mxu0 %v3984_v43 }
 0x320   : > { %3199 = vmatpush3.bf16.msra.mxu0 %v3499_v57 }
 0x321   : > { %3200 = vmatprep.subr.bf16.mxu0 %v3984_v43 }
 0x324   : > { %3201 = vmatpush3.bf16.msra.mxu0 %v3500_v58 }
 0x325   : > { %3202 = vmatprep.subr.bf16.mxu0 %v3984_v43 }
 0x328   : > { %3203 = vmatpush3.bf16.msra.mxu0 %v3501_v59 }
 0x329   : > { %3204 = vmatprep.subr.bf16.mxu0 %v3984_v43 }
 0x32c   : > { %3205 = vmatpush3.bf16.msra.mxu0 %v3502_v60 }
 0x32d   : > { %3206 = vmatprep.subr.bf16.mxu0 %v3984_v43 }
 0x330   : > { %3207 = vmatpush3.bf16.msra.mxu0 %v3503_v61  ;;  %v3524_v61 = vld [vmem:[#allocation16 + $0x8] ss:$28 sps:$4 sm:$0xff]  }
 0x331   : > { %3208 = vmatprep.subr.bf16.mxu0 %v3984_v43 }
 0x334   : > { %3209 = vmatpush3.bf16.msra.mxu0 %v3504_v6  ;;  %v3548_v6 = vld [vmem:[#allocation16 + $0xe8] ss:$28 sps:$4 sm:$0xff]  }
 0x335   : > { %3234 = vmatprep.subr.bf16.mxu0 %v3984_v43 }
 0x3ea   : > { %v1531_v63 = vpop.f32.mrb[8].mxu0 }
 0x3eb   : > { %v1532_v0 = vadd.f32 %v2883_v62, %v1531_v63  ;;  %v3172_v1 = vpop.f32.mrb[9].mxu0  ;;  %v3532_v63 = vld [vmem:[#allocation16 + $0x44] ss:$28 sps:$4 sm:$0xff]  }
 0x3ec   : > { %v1534_v2 = vpop.f32.mrb[10].mxu0  ;;  %v3538_v1 = vld [vmem:[#allocation16 + $0x7c] ss:$28 sps:$4 sm:$0xff]  }
 0x3ed   : > { %v1537_v3 = vmax.f32 %v1532_v0, 0.0  ;;  %v3173_v4 = vpop.f32.mrb[11].mxu0  ;;  %v3530_v0 = vld [vmem:[#allocation16 + $0x40] ss:$28 sps:$4 sm:$0xff]   ;;  %v3536_v2 = vld [vmem:[#allocation16 + $0x78] ss:$28 sps:$4 sm:$0xff]  }
 0x3ee   : > { %v3542_v4 = vld [vmem:[#allocation16 + $0xb0] ss:$28 sps:$4 sm:$0xff]  }
 0x3ef   : > { %v1538_v5 = vpack.c.bf16 %v1537_v3, %v1537_v3  ;;  %v3544_v3 = vld [vmem:[#allocation16 + $0xb4] ss:$28 sps:$4 sm:$0xff]  }
 0x3f1   : > { %3191 = vmatmul.mubr.bf16.vlgmr.msra.gmra.mrb[12].mxu1 %v1538_v5  ;;  %v3550_v5 = vld [vmem:[#allocation16 + $0xec] ss:$28 sps:$4 sm:$0xff]  }
 0x3f2   : > { %3230 = vmatprep.mubr.msk.bf16.mxu1 %vm3985_vm0, %v3984_v43  ;;  %3215 = vmatpush3.bf16.msra.mxu1 %v3505_v7  ;;  %v3556_v7 = vld [vmem:[#allocation16 + $0x124] ss:$28 sps:$4 sm:$0xff]  }
 0x3f3   : > { %3216 = vmatprep.subr.bf16.mxu1 %v3984_v43 }
 0x3f6   : > { %3217 = vmatpush3.bf16.msra.mxu1 %v3506_v8  ;;  %v3554_v8 = vld [vmem:[#allocation16 + $0x120] ss:$28 sps:$4 sm:$0xff]  }
 0x3f7   : > { %3218 = vmatprep.subr.bf16.mxu1 %v3984_v43 }
 0x3fa   : > { %3219 = vmatpush3.bf16.msra.mxu1 %v3507_v9  ;;  %v3562_v9 = vld [vmem:[#allocation16 + $0x15c] ss:$28 sps:$4 sm:$0xff]  }
 0x3fb   : > { %3220 = vmatprep.subr.bf16.mxu1 %v3984_v43 }
 0x3fe   : > { %3221 = vmatpush3.bf16.msra.mxu1 %v3508_v10  ;;  %v3560_v10 = vld [vmem:[#allocation16 + $0x158] ss:$28 sps:$4 sm:$0xff]  }
 0x3ff   : > { %3222 = vmatprep.subr.bf16.mxu1 %v3984_v43 }
 0x402   : > { %3223 = vmatpush3.bf16.msra.mxu1 %v3509_v11  ;;  %v3565_v11 = vld [vmem:[#allocation16 + $0x18c] ss:$28 sps:$4 sm:$0xff]  }
 0x403   : > { %3224 = vmatprep.subr.bf16.mxu1 %v3984_v43 }
 0x406   : > { %3225 = vmatpush3.bf16.msra.mxu1 %v3510_v12  ;;  %v3568_v12 = vld [vmem:[#allocation16 + $0x194] ss:$28 sps:$4 sm:$0xff]  }
 0x407   : > { %3226 = vmatprep.subr.bf16.mxu1 %v3984_v43 }
 0x40a   : > { %3227 = vmatpush3.bf16.msra.mxu1 %v3511_v20 }
 0x40b   : > { %3228 = vmatprep.subr.bf16.mxu1 %v3984_v43 }
 0x40e   : > { %3229 = vmatpush3.bf16.msra.mxu1 %v3512_v21 }
 0x40f   : > { %2380 = vmatprep.subr.bf16.mxu1 %v3523_v39  ;;  %v3591_v39 = vld [vmem:[#allocation16 + $0x12c] ss:$28 sps:$4 sm:$0xff]  }
 0x4c4   : > { %v1644_v14 = vpop.f32.mrb[12].mxu1 }
 0x4c5   : > { %v1645_v15 = vadd.f32 %v2892_v13, %v1644_v14  ;;  %v3192_v16 = vpop.f32.mrb[13].mxu1  ;;  %v3563_v13 = vld [vmem:[#allocation16 + $0x188] ss:$28 sps:$4 sm:$0xff]   ;;  %v3566_v14 = vld [vmem:[#allocation16 + $0x190] ss:$28 sps:$4 sm:$0xff]  }
 0x4c6   : > { %v1647_v17 = vpop.f32.mrb[14].mxu1  ;;  %v3986_v16 = vmov 0  }
 0x4c7   : > { %v1650_v18 = vpack.c.bf16 %v1645_v15, %v1645_v15  ;;  %v3193_v19 = vpop.f32.mrb[15].mxu1  ;;  %v3571_v15 = vld [vmem:[#allocation16 + $0x14] ss:$28 sps:$4 sm:$0xff]   ;;  %v2919_v17 = vld [vmem:[%s4661_s16] ss:$0 sm:$0xff] }
 0x4c9   : > { %1651 = vst [vmem:[%s4485_s22] sm:$0xf] %v1650_v18  ;;  %3211 = vmatmul.mubr.bf16.vlgmr.msra.gmra.mrb[12].mxu0 %v1650_v18 }
 0x4ca   : > { %3250 = vmatprep.mubr.msk.bf16.mxu0 %vm3985_vm0, %v3984_v43  ;;  %3235 = vmatpush3.bf16.msra.mxu0 %v3513_v22 }
 0x4cb   : > { %3236 = vmatprep.subr.bf16.mxu0 %v3984_v43 }
 0x4ce   : > { %3237 = vmatpush3.bf16.msra.mxu0 %v3514_v23 }
 0x4cf   : > { %3238 = vmatprep.subr.bf16.mxu0 %v3984_v43 }
 0x4d2   : > { %3239 = vmatpush3.bf16.msra.mxu0 %v3515_v24  ;;  %v3569_v24 = vld [vmem:[#allocation16 + $0x10] ss:$28 sps:$4 sm:$0xff]  }
 0x4d3   : > { %3240 = vmatprep.subr.bf16.mxu0 %v3984_v43 }
 0x4d6   : > { %3241 = vmatpush3.bf16.msra.mxu0 %v3516_v25  ;;  %v3572_v25 = vld [vmem:[#allocation16 + $0x18] ss:$28 sps:$4 sm:$0xff]  }
 0x4d7   : > { %3242 = vmatprep.subr.bf16.mxu0 %v3984_v43 }
 0x4da   : > { %3243 = vmatpush3.bf16.msra.mxu0 %v3517_v26 }
 0x4db   : > { %3244 = vmatprep.subr.bf16.mxu0 %v3984_v43 }
 0x4de   : > { %3245 = vmatpush3.bf16.msra.mxu0 %v3518_v27  ;;  %v3575_v27 = vld [vmem:[#allocation16 + $0x4c] ss:$28 sps:$4 sm:$0xff]  }
 0x4df   : > { %3246 = vmatprep.subr.bf16.mxu0 %v3984_v43 }
 0x4e2   : > { %3247 = vmatpush3.bf16.msra.mxu0 %v3519_v36  ;;  %v3587_v36 = vld [vmem:[#allocation16 + $0xf4] ss:$28 sps:$4 sm:$0xff]  }
 0x4e3   : > { %3248 = vmatprep.subr.bf16.mxu0 %v3984_v43 }
 0x4e6   : > { %3249 = vmatpush3.bf16.msra.mxu0 %v3520_v37  ;;  %v3585_v37 = vld [vmem:[#allocation16 + $0xf0] ss:$28 sps:$4 sm:$0xff]  }
 0x4e7   : > { %2421 = vmatprep.subr.bf16.mxu0 %v3526_v40  ;;  %v3589_v40 = vld [vmem:[#allocation16 + $0x128] ss:$28 sps:$4 sm:$0xff]  }
 0x59c   : > { %v1757_v29 = vpop.f32.mrb[12].mxu0 }
 0x59d   : > { %v1758_v30 = vadd.f32 %v2901_v28, %v1757_v29  ;;  %v3212_v31 = vpop.f32.mrb[13].mxu0  ;;  %v3573_v28 = vld [vmem:[#allocation16 + $0x48] ss:$28 sps:$4 sm:$0xff]   ;;  %v3576_v29 = vld [vmem:[#allocation16 + $0x50] ss:$28 sps:$4 sm:$0xff]  }
 0x59e   : > { %v1760_v32 = vpop.f32.mrb[14].mxu0  ;;  %v3577_v31 = vld [vmem:[#allocation16 + $0x80] ss:$28 sps:$4 sm:$0xff]  }
 0x59f   : > { %v1763_v33 = vmax.f32 %v1758_v30, 0.0  ;;  %v3213_v34 = vpop.f32.mrb[15].mxu0  ;;  %v3579_v30 = vld [vmem:[#allocation16 + $0x84] ss:$28 sps:$4 sm:$0xff]  }
 0x5a0   : > { %v3580_v32 = vld [vmem:[#allocation16 + $0x88] ss:$28 sps:$4 sm:$0xff]   ;;  %v3581_v34 = vld [vmem:[#allocation16 + $0xb8] ss:$28 sps:$4 sm:$0xff]  }
 0x5a1   : > { %v1764_v35 = vpack.c.bf16 %v1763_v33, %v1763_v33  ;;  %v3583_v33 = vld [vmem:[#allocation16 + $0xbc] ss:$28 sps:$4 sm:$0xff]  }
 0x5a3   : > { %3231 = vmatmul.mubr.bf16.vlgmr.msra.gmra.mrb[16].mxu1 %v1764_v35  ;;  %v3584_v35 = vld [vmem:[#allocation16 + $0xc0] ss:$28 sps:$4 sm:$0xff]  }
 0x5a4   : > { %2381 = vmatpush1.bf16.msra.mxu1 %v3521_v38  ;;  %2412 = vmatprep.mubr.bf16.mxu1 %v3986_v16  ;;  %v3588_v38 = vld [vmem:[#allocation16 + $0xf8] ss:$28 sps:$4 sm:$0xff]  }
 0x5a5   : > { %2382 = vmatprep.subr.bf16.mxu1 %v3529_v41  ;;  %v3592_v41 = vld [vmem:[#allocation16 + $0x130] ss:$28 sps:$4 sm:$0xff]  }
 0x5a8   : > { %2383 = vmatpush1.bf16.msra.mxu1 %v3527_v42  ;;  %v3595_v42 = vld [vmem:[#allocation16 + $0x164] ss:$28 sps:$4 sm:$0xff]  }
 0x5a9   : > { %2384 = vmatprep.subr.bf16.mxu1 %v3535_v44  ;;  %v3593_v44 = vld [vmem:[#allocation16 + $0x160] ss:$28 sps:$4 sm:$0xff]  }
 0x5ac   : > { %2385 = vmatpush1.bf16.msra.mxu1 %v3533_v45  ;;  %v3596_v45 = vld [vmem:[#allocation16 + $0x168] ss:$28 sps:$4 sm:$0xff]  }
 0x5ad   : > { %2386 = vmatprep.subr.bf16.mxu1 %v3541_v46  ;;  %v3599_v46 = vld [vmem:[#allocation16 + $0x19c] ss:$28 sps:$4 sm:$0xff]  }
 0x5b0   : > { %2387 = vmatpush1.bf16.msra.mxu1 %v3539_v47  ;;  %v3597_v47 = vld [vmem:[#allocation16 + $0x198] ss:$28 sps:$4 sm:$0xff]  }
 0x5b1   : > { %2388 = vmatprep.subr.bf16.mxu1 %v3547_v48  ;;  %v3600_v48 = vld [vmem:[#allocation16 + $0x1a0] ss:$28 sps:$4 sm:$0xff]  }
 0x5b4   : > { %2389 = vmatpush1.bf16.msra.mxu1 %v3545_v49 }
 0x5b5   : > { %2390 = vmatprep.subr.bf16.mxu1 %v3553_v50 }
 0x5b8   : > { %2391 = vmatpush1.bf16.msra.mxu1 %v3551_v51 }
 0x5b9   : > { %2392 = vmatprep.subr.bf16.mxu1 %v3559_v52 }
 0x5bc   : > { %2393 = vmatpush1.bf16.msra.mxu1 %v3557_v53 }
 0x5bd   : > { %2394 = vmatprep.subr.bf16.mxu1 %v3565_v11 }
 0x5c0   : > { %2395 = vmatpush1.bf16.msra.mxu1 %v3563_v13 }
 0x5c1   : > { %2462 = vmatprep.subr.bf16.mxu1 %v3571_v15 }
 0x676   : > { %v1870_v55 = vpop.f32.mrb[16].mxu1 }
 0x677   : > { %v1871_v56 = vadd.f32 %v2910_v54, %v1870_v55  ;;  %v3232_v57 = vpop.f32.mrb[17].mxu1 }
 0x678   : > { %v1873_v58 = vpop.f32.mrb[18].mxu1 }
 0x679   : > { %v1876_v59 = vmax.f32 %v1871_v56, 0.0  ;;  %v3233_v60 = vpop.f32.mrb[19].mxu1 }
 0x67b   : > { %v1877_v62 = vpack.c.bf16 %v1876_v59, %v1876_v59 }
 0x67d   : > { %3251 = vmatmul.mubr.bf16.vlgmr.msra.gmra.mrb[16].mxu0 %v1877_v62 }
 0x67e   : > { %2422 = vmatpush1.bf16.msra.mxu0 %v3524_v61  ;;  %2453 = vmatprep.mubr.bf16.mxu0 %v3986_v16 }
 0x67f   : > { %2423 = vmatprep.subr.bf16.mxu0 %v3532_v63 }
 0x682   : > { %2424 = vmatpush1.bf16.msra.mxu0 %v3530_v0 }
 0x683   : > { %2425 = vmatprep.subr.bf16.mxu0 %v3538_v1 }
 0x686   : > { %2426 = vmatpush1.bf16.msra.mxu0 %v3536_v2 }
 0x687   : > { %2427 = vmatprep.subr.bf16.mxu0 %v3544_v3 }
 0x68a   : > { %2428 = vmatpush1.bf16.msra.mxu0 %v3542_v4 }
 0x68b   : > { %2429 = vmatprep.subr.bf16.mxu0 %v3550_v5 }
 0x68e   : > { %2430 = vmatpush1.bf16.msra.mxu0 %v3548_v6 }
 0x68f   : > { %2431 = vmatprep.subr.bf16.mxu0 %v3556_v7 }
 0x692   : > { %2432 = vmatpush1.bf16.msra.mxu0 %v3554_v8 }
 0x693   : > { %2433 = vmatprep.subr.bf16.mxu0 %v3562_v9 }
 0x696   : > { %2434 = vmatpush1.bf16.msra.mxu0 %v3560_v10 }
 0x697   : > { %2435 = vmatprep.subr.bf16.mxu0 %v3568_v12 }
 0x69a   : > { %2436 = vmatpush1.bf16.msra.mxu0 %v3566_v14 }
 0x69b   : > { %3254 = vmatprep.subr.bf16.mxu0 %v3984_v43 }
 0x750   : > { %v1983_v18 = vpop.f32.mrb[16].mxu0 }
 0x751   : > { %v1984_v19 = vadd.f32 %v2919_v17, %v1983_v18  ;;  %v3252_v20 = vpop.f32.mrb[17].mxu0 }
 0x752   : > { %v1986_v21 = vpop.f32.mrb[18].mxu0 }
 0x753   : > { %v1989_v22 = vmax.f32 %v1984_v19, 0.0  ;;  %v3253_v23 = vpop.f32.mrb[19].mxu0 }
 0x755   : > { %v1990_v26 = vpack.c.bf16 %v1989_v22, %v1989_v22 }
 0x757   : > { %2413 = vmatmul.mubr.bf16.vlgmr.msra.gmra.mrb[20].mxu1 %v1990_v26  ;;  %2454 = vmatmul.mubr.bf16.vlgmr.msra.gmra.mrb[20].mxu0 %v1990_v26 }
 0x758   : > { %2463 = vmatpush1.bf16.msra.mxu1 %v3569_v24  ;;  %3255 = vmatpush3.bf16.msra.mxu0 %v3572_v25 }
 0x759   : > { %2464 = vmatprep.subr.bf16.mxu1 %v3575_v27  ;;  %3256 = vmatprep.subr.bf16.mxu0 %v3984_v43 }
 0x75a   : > { %2494 = vmatprep.mubr.bf16.mxu1 %v3986_v16  ;;  %3270 = vmatprep.mubr.msk.bf16.mxu0 %vm3985_vm0, %v3984_v43 }
 0x75c   : > { %2465 = vmatpush1.bf16.msra.mxu1 %v3573_v28  ;;  %3257 = vmatpush3.bf16.msra.mxu0 %v3576_v29 }
 0x75d   : > { %2466 = vmatprep.subr.bf16.mxu1 %v3579_v30  ;;  %3258 = vmatprep.subr.bf16.mxu0 %v3984_v43 }
 0x760   : > { %2467 = vmatpush1.bf16.msra.mxu1 %v3577_v31  ;;  %3259 = vmatpush3.bf16.msra.mxu0 %v3580_v32 }
 0x761   : > { %2468 = vmatprep.subr.bf16.mxu1 %v3583_v33  ;;  %3260 = vmatprep.subr.bf16.mxu0 %v3984_v43 }
 0x764   : > { %2469 = vmatpush1.bf16.msra.mxu1 %v3581_v34  ;;  %3261 = vmatpush3.bf16.msra.mxu0 %v3584_v35 }
 0x765   : > { %2470 = vmatprep.subr.bf16.mxu1 %v3587_v36  ;;  %3262 = vmatprep.subr.bf16.mxu0 %v3984_v43 }
 0x768   : > { %2471 = vmatpush1.bf16.msra.mxu1 %v3585_v37  ;;  %3263 = vmatpush3.bf16.msra.mxu0 %v3588_v38 }
 0x769   : > { %2472 = vmatprep.subr.bf16.mxu1 %v3591_v39  ;;  %3264 = vmatprep.subr.bf16.mxu0 %v3984_v43 }
 0x76c   : > { %2473 = vmatpush1.bf16.msra.mxu1 %v3589_v40  ;;  %3265 = vmatpush3.bf16.msra.mxu0 %v3592_v41 }
 0x76d   : > { %2474 = vmatprep.subr.bf16.mxu1 %v3595_v42  ;;  %3266 = vmatprep.subr.bf16.mxu0 %v3984_v43 }
 0x770   : > { %2475 = vmatpush1.bf16.msra.mxu1 %v3593_v44  ;;  %3267 = vmatpush3.bf16.msra.mxu0 %v3596_v45 }
 0x771   : > { %2476 = vmatprep.subr.bf16.mxu1 %v3599_v46  ;;  %3268 = vmatprep.subr.bf16.mxu0 %v3984_v43 }
 0x774   : > { %2477 = vmatpush1.bf16.msra.mxu1 %v3597_v47  ;;  %3269 = vmatpush3.bf16.msra.mxu0 %v3600_v48 }
 0x777   : > { %2495 = vmatmul.mubr.bf16.vlgmr.msra.gmra.mrb[24].mxu1 %v1990_v26  ;;  %3271 = vmatmul.mubr.bf16.vlgmr.msra.gmra.mrb[24].mxu0 %v1990_v26 }
 0x778   : > { %3868 = shalt.err (!%p3865_p10)
}
 0x779   : > { %s3869_s22 = scalar_lea.hbm %s4522_s19, 64  ;;  %s3873_s17 = scalar_lea.hbm %s4662_s2, 128 }
 0x77a   : > { %p3870_p11 = scmp.ne.s32.totalorder %s4522_s19, %s3869_s22  ;;  %p3874_p7 = scmp.lt.u32.totalorder %s4522_s19, %s4662_s2 }
 0x77b   : > { %p3875_p5 = scmp.lt.u32.totalorder %s3873_s17, %s3869_s22  ;;  %p3877_p12 = scmp.lt.u32.totalorder %s3869_s22, %s4522_s19 }
 0x77c   : > { %p3871_p8 = pnand %p3870_p11, %p4663_p1 }
 0x77d   : > { %p3876_p9 = por %p3875_p5, %p3874_p7 }
 0x77e   : > { %p3872_p6 = pneg %p3871_p8 }
 0x77f   : > { %p3878_p13 = por %p3877_p12, %p3876_p9 }
 0x781   : > { %p3879_p0 = pnand %p3878_p13, %p3872_p6 }
 0x783   : > { %3882 = shalt.err (!%p3879_p0)
}
 0x784   : > { %3312 = dma.vmem_to_hbm [thread:$0]  (%p4663_p1), %s2603_s3, 64, %s4522_s19, %s2584_s12   ;;  %v2057_v43 = vlaneseq }
 0x785   : > { %s4664_s0 = sld [smem:[#allocation37_spill]]  ;;  %s718_s3 = scalar_lea.vmem [#allocation18], %s3276_s8 }
 0x786   : > { %v2058_v49 = vshrl.u32 %v2057_v43, 7  ;;  %s3277_s8 = smul.u32 448, %s4105_s1  ;;  %s2616_s19 = sshll.u32 %s718_s3, 4  ;;  %s4553_s19 = int_to_ptr.vmem [resolvable:$true] %s2616_s19 }
 0x787   : > { %s4665_s16 = sld [smem:[#allocation39_spill]]  ;;  %s2589_s1 = scalar_lea.sflag [#allocation19], %s4387_s5 }
 0x788   : > { %v2059_v50 = vsub.s32 0, %v2058_v49  ;;  %v2067_v51 = vsub.s32 2, %v2058_v49  ;;  %v2063_v53 = vsub.s32 1, %v2058_v49  ;;  %v2071_v54 = vsub.s32 3, %v2058_v49  ;;  %s3883_s17 = scalar_lea.vmem %s4553_s19, 448  ;;  %s3988_s20 = smov [#allocation18]  }
 0x789   : > { %v2075_v13 = vsub.s32 4, %v2058_v49  ;;  %v2083_v14 = vsub.s32 6, %v2058_v49  ;;  %v2079_v15 = vsub.s32 5, %v2058_v49  ;;  %p3884_p2 = scmp.ne.s32.totalorder %s4553_s19, %s3883_s17  ;;  %s3887_s24 = sshll.u32 %s3988_s20, 4  ;;  %s3888_s24 = int_to_ptr.vmem [resolvable:$false] %s3887_s24 }
 0x78a   : > { %s3889_s6 = scalar_lea.vmem %s3888_s24, 896  ;;  %p3890_p10 = scmp.lt.s32.totalorder %s4553_s19, %s3888_s24 }
 0x78b   : > { %v2055_v52 = vld [vmem:[%s4664_s0] sm:$0xff]  ;;  %p3885_p3 = pnand %p3884_p2, %p4663_p1  ;;  %p3891_p11 = scmp.lt.s32.totalorder %s3889_s6, %s3883_s17 }
 0x78c   : > { %v2060_v55 = vrot.slane %v2055_v52, %v2059_v50  ;;  %v2068_v56 = vrot.slane %v2055_v52, %v2067_v51  ;;  %v2064_v57 = vrot.slane %v2055_v52, %v2063_v53  ;;  %v2072_v58 = vrot.slane %v2055_v52, %v2071_v54 }
 0x78d   : > { %v2076_v16 = vrot.slane %v2055_v52, %v2075_v13  ;;  %v2084_v17 = vrot.slane %v2055_v52, %v2083_v14  ;;  %v2080_v18 = vrot.slane %v2055_v52, %v2079_v15  ;;  %s4551_s10 = scalar_lea.hbm %s4665_s16, %s3277_s8  ;;  %p3886_p4 = pneg %p3885_p3 }
 0x78e   : > { %p3892_p8 = por %p3891_p11, %p3890_p10 }
 0x790   : > { %p3893_p6 = pnand %p3892_p8, %p3886_p4 }
 0x82a   : > { %v2414_v59 = vpop.f32.mrb[20].mxu1  ;;  %v2455_v60 = vpop.f32.mrb[20].mxu0 }
 0x82b   : > { %v2415_v61 = vadd.f32 %v2414_v59, %v2060_v55  ;;  %v2456_v62 = vadd.f32 %v2455_v60, %v2068_v56  ;;  %v2416_v63 = vpop.f32.mrb[21].mxu1  ;;  %v2457_v0 = vpop.f32.mrb[21].mxu0 }
 0x82c   : > { %v2417_v1 = vadd.f32 %v2416_v63, %v2064_v57  ;;  %v2458_v2 = vadd.f32 %v2457_v0, %v2072_v58  ;;  %v2418_v3 = vpop.f32.mrb[22].mxu1  ;;  %v2459_v4 = vpop.f32.mrb[22].mxu0 }
 0x82d   : > { %v2543_v5 = vmax.f32 %v2415_v61, 0.0  ;;  %v2545_v6 = vmax.f32 %v2456_v62, 0.0  ;;  %v2419_v7 = vpop.f32.mrb[23].mxu1  ;;  %v2460_v8 = vpop.f32.mrb[23].mxu0 }
 0x82e   : > { %v2544_v9 = vmax.f32 %v2417_v1, 0.0  ;;  %v2546_v10 = vmax.f32 %v2458_v2, 0.0 }
 0x830   : > { %v2993_v11 = vpack.c.bf16 %v2544_v9, %v2543_v5  ;;  %v2994_v12 = vpack.c.bf16 %v2546_v10, %v2545_v6 }
 0x832   : > { %2579 = vst [vmem:[%s718_s3] sm:$0xff] %v2993_v11  ;;  %2580 = vst [vmem:[%s718_s3 + $0x8] sm:$0xff] %v2994_v12 }
 0x84a   : > { %v2496_v19 = vpop.f32.mrb[24].mxu1  ;;  %v2537_v20 = vpop.f32.mrb[24].mxu0 }
 0x84b   : > { %v2497_v21 = vadd.f32 %v2496_v19, %v2076_v16  ;;  %v2538_v22 = vadd.f32 %v2537_v20, %v2084_v17  ;;  %v2498_v23 = vpop.f32.mrb[25].mxu1  ;;  %v3272_v24 = vpop.f32.mrb[25].mxu0 }
 0x84c   : > { %v2499_v25 = vadd.f32 %v2498_v23, %v2080_v18  ;;  %v2500_v26 = vpop.f32.mrb[26].mxu1  ;;  %v2540_v27 = vpop.f32.mrb[26].mxu0 }
 0x84d   : > { %v2547_v28 = vmax.f32 %v2497_v21, 0.0  ;;  %v2549_v29 = vmax.f32 %v2538_v22, 0.0  ;;  %v2501_v30 = vpop.f32.mrb[27].mxu1  ;;  %v3273_v31 = vpop.f32.mrb[27].mxu0 }
 0x84e   : > { %v2548_v32 = vmax.f32 %v2499_v25, 0.0 }
 0x84f   : > { %v2996_v33 = vpack.c.bf16 %v2549_v29, %v2549_v29 }
 0x850   : > { %v2995_v34 = vpack.c.bf16 %v2548_v32, %v2547_v28 }
 0x851   : > { %2582 = vst [vmem:[%s718_s3 + $0x18] sm:$0xf] %v2996_v33 }
 0x852   : > { %2581 = vst [vmem:[%s718_s3 + $0x10] sm:$0xff] %v2995_v34 }
 0x853   : > { %3896 = shalt.err (!%p3893_p6)
}
 0x854   : > { %s3897_s5 = scalar_lea.hbm %s4551_s10, 448  ;;  %s3901_s3 = scalar_lea.hbm %s4665_s16, 896 }
 0x855   : > { %p3898_p7 = scmp.ne.s32.totalorder %s4551_s10, %s3897_s5  ;;  %p3902_p12 = scmp.lt.u32.totalorder %s4551_s10, %s4665_s16 }
 0x856   : > { %p3903_p13 = scmp.lt.u32.totalorder %s3901_s3, %s3897_s5  ;;  %p3905_p2 = scmp.lt.u32.totalorder %s3897_s5, %s4551_s10 }
 0x857   : > { %p3899_p5 = pnand %p3898_p7, %p4663_p1 }
 0x858   : > { %p3904_p0 = por %p3903_p13, %p3902_p12 }
 0x859   : > { %p3900_p9 = pneg %p3899_p5 }
 0x85a   : > { %p3906_p3 = por %p3905_p2, %p3904_p0 }
 0x85c   : > { %p3907_p4 = pnand %p3906_p3, %p3900_p9 }
 0x85e   : > { %3910 = shalt.err (!%p3907_p4)
}
 0x85f   : > { %3313 = dma.vmem_to_hbm [thread:$0]  (%p4663_p1), %s4553_s19, 448, %s4551_s10, %s2589_s1  }
 0x860 PF: > { %s2628_s22 = sand.u32 1, %s3957_s27   ;;  %p4666_p10 = scmp.ne.s32.totalorder %s4644_s23, 0 }
 0x861   : > { %p4667_p11 = scmp.ge.s32.totalorder %s3969_s30, 2  ;;  %s2629_s17 = scalar_lea.sflag [#allocation4], %s2628_s22 }
 0x863   : > { %p3346_p8 = pnand %p4667_p11, %p4666_p10 }
 0x865   : > { %3948 = dma.done.wait (!%p3346_p8), %s2629_s17, 64  }
 0x866   : > { %3950 = vsyncadd (!%p3346_p8), %s2629_s17, 4294967232  ;;  %s2638_s20 = scalar_lea.sflag [#allocation19], %s2628_s22 }
 0x867   : > { %3952 = dma.done.wait (!%p3346_p8), %s2638_s20, 448  }
 0x868   : > { %3954 = vsyncadd (!%p3346_p8), %s2638_s20, 4294966848  ;;  %p39_p1 = scmp.ge.s32.totalorder %s4317_s18, 4   ;;  %s4668_s27 = smov %s3961_s28 }
 0x869   : > { %s4669_s28 = smov %s3965_s29  ;;  %s4670_s29 = smov %s4328_s25 }
 0x86a   : > { %s4671_s30 = smov %s4317_s18  ;;  %41 = sbr.rel (!%p39_p1) target bundleno = 25 (0x19), region = 182 }
 0x871   :  { %2643 = vsyncpa [#allocation3], 1 }
 0x872   :  { %2645 = vsyncpa [#allocation3 + $0x1], 1 }
 0x873   :  { %2646 = vsyncpa [#allocation6], 1 }
 0x874   :  { %2647 = vsyncpa [#allocation9], 1 }
 0x875   :  { %2648 = vsyncpa [#allocation12], 1 }
 0x876   :  { %2649 = vsyncpa [#allocation15], 1 }
 0x877   :  { %2650 = vsyncpa [#allocation4], 1 }
 0x878   :  { %2652 = vsyncpa [#allocation4 + $0x1], 1 }
 0x879   :  { %2653 = vsyncpa [#allocation19], 1 }
 0x87a   :  { %2655 = vsyncpa [#allocation19 + $0x1], 1 }

</bundles_post_ra>
